<compile_context>
chip_gen: v7x
topology: tpu7x:2x2x1
jax: 0.10.0
libtpu: 0.0.40
codegen_flags: <defaults>
</compile_context>

<pallas_src>
import functools

import jax
import jax.numpy as jnp
from jax.experimental import pallas as pl
from jax.experimental.pallas import tpu as pltpu


_NEG = -1e30  # effectively -inf for padded labels, but finite so no NaN from inf-inf


def tree_crf_kernel(h_ref, wt_ref, b_ref, tmax_ref, exp_tt_ref, out_ref, em_ref,
                    *, depth, tb):
    """Whole TreeCRF forward for one block of `tb` trees.

    h_ref     : (num_nodes, tb, input_size) bf16 node hidden states, level-major
                node order, this block's trees along axis 1
    wt_ref    : (input_size, L_pad) bf16     pred_layer weight, transposed, zero-padded
    b_ref     : (1, L_pad) f32               pred_layer bias, padded with _NEG
    tmax_ref  : (1, L_pad) f32               max_i trans[k, i]  (hoisted to wrapper)
    exp_tt_ref: (L_pad, L_pad) f32           exp(trans[k,i] - tmax[k]) laid out [i, k]
    out_ref   : (tb, L_pad) f32              root inside score per tree in this block
    em_ref    : (num_nodes*tb, L_pad) f32    VMEM scratch; emission, then reused as
                                             the bottom-up `inside` buffer
    """
    num_nodes = 2 ** (depth + 1) - 1

    wt = wt_ref[...]
    b = b_ref[...]
    # Emission scores for every node of every tree in the block.
    # Per-node (tb, D) @ (D, L_pad) bf16 matmuls (f32 accumulate) keep the 3-D h
    # block free of in-kernel reshapes; the emission GEMM (K = input_size) is a
    # small share of total MXU work next to the per-level L_pad-wide LSE matmuls.
    for n in range(num_nodes):
        em_ref[pl.ds(n * tb, tb), :] = (
            jnp.dot(h_ref[n], wt, preferred_element_type=jnp.float32) + b)

    # Transition factors are precomputed in the wrapper (invariant across blocks).
    exp_tt = exp_tt_ref[...]          # exp(trans[k,i] - tmax[k]) at [i, k]
    tmax = tmax_ref[...]              # (1, L_pad)

    # Bottom-up over levels; topology is compile-time fixed, static unroll.
    # em_ref doubles as the inside buffer: leaves' inside == emission (already
    # in place), each level overwrites its parent rows with parent inside scores.
    # NOTE: the factored LSE shifts by max_i(x) + max_i(trans[k,i]) (an upper
    # bound of the joint max); fine for typical CRF magnitudes, can underflow to
    # -inf only for extreme dynamic ranges.
    # TODO(synk): switch to lax.fori_loop over a padded per-level buffer if
    # depth grows beyond ~10 (code size / vreg live-range pressure).
    for d in range(depth - 1, -1, -1):
        rows = (2 ** d) * tb                              # multiple of tb (16-aligned)
        off = (2 ** d - 1) * tb                           # sublane-aligned offset
        parent_em = em_ref[pl.ds(off, rows), :]           # (rows, L_pad)
        children = em_ref[pl.ds(off + rows, 2 * rows), :]  # [left | right] halves
        # Fused LSE over both children: one max/exp pass, ONE MXU matmul.
        m = jnp.max(children, axis=-1, keepdims=True)     # (2*rows, 1)
        s = jnp.dot(jnp.exp(children - m), exp_tt,        # f32 matmul (accuracy)
                    preferred_element_type=jnp.float32)   # (2*rows, L_pad)
        lse = jnp.log(s) + m + tmax                       # (2*rows, L_pad)
        result = parent_em + lse[:rows, :] + lse[rows:, :]
        if d > 0:
            em_ref[pl.ds(off, rows), :] = result
        else:
            out_ref[...] = result                         # (tb, L_pad), lane-dense store


def tree_crf_forward(h_nodes, weight, bias, trans, *, depth, trees_per_block=32):
    """Batched TreeCRF forward.

    h_nodes: (num_nodes, B, input_size) — per-node bu_state['h'] for B trees in
             node-major (level-major) storage, ideally already bf16 so no cast /
             transpose HBM round trip happens in the wrapper.
    Returns root inside scores, shape (B, num_labels).
    """
    num_nodes, B, input_size = h_nodes.shape
    num_labels = weight.shape[0]
    assert num_nodes == 2 ** (depth + 1) - 1
    tb = trees_per_block
    assert B % tb == 0 and tb % 16 == 0, \
        "batch must tile into 16-aligned tree blocks (bf16 sublane packing)"
    num_blocks = B // tb

    L_pad = ((num_labels + 127) // 128) * 128          # lane-dense label axis
    f32 = jnp.float32
    bf16 = jnp.bfloat16

    # bf16 hidden states for the emission GEMM (f32 accumulation on the MXU).
    h_bf = h_nodes if h_nodes.dtype == bf16 else h_nodes.astype(bf16)

    # Padded / transposed parameter layouts + hoisted transition prep (tiny, once per call).
    wt_pad = jnp.zeros((input_size, L_pad), bf16).at[:, :num_labels].set(
        weight.T.astype(bf16))
    b_pad = jnp.full((1, L_pad), _NEG, f32).at[0, :num_labels].set(bias.astype(f32))
    trans_pad = jnp.full((L_pad, L_pad), _NEG, f32).at[:num_labels, :num_labels].set(
        trans.astype(f32))
    trans_t = trans_pad.T                              # [i, k] = trans[k, i]
    tmax = jnp.max(trans_t, axis=0, keepdims=True)     # (1, L_pad): max_i trans[k, i]
    exp_tt = jnp.exp(trans_t - tmax)                   # exp(trans[k,i]-tmax[k]) at [i,k]

    # Explicit VMEM budget (v7x has 64 MiB per TC; default scoped limit is 32 MiB).
    leaf_rows = (2 ** depth) * tb
    vmem_est = (
        2 * num_nodes * tb * input_size * 2                       # double-buffered h tile
        + 2 * (input_size * L_pad * 2 + 2 * L_pad * 4 + L_pad * L_pad * 4)  # params (x2 bufs)
        + 2 * tb * L_pad * 4                                      # output tile
        + num_nodes * tb * L_pad * 4                              # em/inside scratch
        + 3 * leaf_rows * L_pad * 4)                              # live leaf-level temporaries
    assert vmem_est < 48 * 1024 * 1024, \
        "VMEM budget exceeded for v7x: shrink trees_per_block or level-tile the h fetch"
    # TODO(synk): for very deep trees / large hidden sizes, add a second
    # 'arbitrary' grid axis over tree levels (h BlockSpec fetches one level,
    # inside carried in scratch) so resident h/em shrinks from all nodes to one level.

    out = pl.pallas_call(
        functools.partial(tree_crf_kernel, depth=depth, tb=tb),
        out_shape=jax.ShapeDtypeStruct((B, L_pad), f32),
        grid_spec=pltpu.PrefetchScalarGridSpec(
            num_scalar_prefetch=0,
            grid=(num_blocks,),
            in_specs=[
                # natural node-major storage: no wrapper-side transpose of h
                pl.BlockSpec((num_nodes, tb, input_size), lambda g: (0, g, 0)),
                pl.BlockSpec((input_size, L_pad), lambda g: (0, 0)),
                pl.BlockSpec((1, L_pad), lambda g: (0, 0)),
                pl.BlockSpec((1, L_pad), lambda g: (0, 0)),
                pl.BlockSpec((L_pad, L_pad), lambda g: (0, 0)),
            ],
            out_specs=pl.BlockSpec((tb, L_pad), lambda g: (g, 0)),
            scratch_shapes=[pltpu.VMEM((num_nodes * tb, L_pad), f32)],
        ),
        compiler_params=pltpu.CompilerParams(
            dimension_semantics=("parallel",),
            vmem_limit_bytes=48 * 1024 * 1024),
    )(h_bf, wt_pad, b_pad, tmax, exp_tt)

    # TODO(synk): if num_labels stays tiny (e.g. 8), a lane-packed VPU/XLU
    # reduction (several child LSE problems per 128-lane vreg) could beat the
    # L_pad=128 padded-matmul form; kept the matmul form for generality.
    return out[:, :num_labels]


def tree_crf_reference(h_nodes, weight, bias, trans, *, depth):
    """Plain-JAX reference following the PyTorch recursion literally for ONE tree
    (full [L, L, L] score tensor, logsumexp over flattened L*L)."""
    L = trans.shape[0]
    em = jnp.einsum('nd,ld->nl', h_nodes, weight,
                    precision=jax.lax.Precision.HIGHEST) + bias   # [num_nodes, L]
    leaf_start = 2 ** depth - 1
    inside = em[leaf_start:leaf_start + 2 ** depth]
    for d in range(depth - 1, -1, -1):
        count = 2 ** d
        off = count - 1
        pem = em[off:off + count]
        left = inside[:count]
        right = inside[count:]
        ls = (left[:, None, :] + trans[None, :, :])[:, :, :, None]   # [count, L, L, 1]
        rs = (right[:, None, :] + trans[None, :, :])[:, :, None, :]  # [count, L, 1, L]
        score = pem[:, :, None, None] + ls + rs                      # [count, L, L, L]
        inside = jax.scipy.special.logsumexp(score.reshape(count, L, L * L), axis=-1)
    return inside[0]


if __name__ == "__main__":
    # Small synthetic configuration.
    input_size = 32
    num_labels = 8
    depth = 3                          # complete binary tree: 8 leaves, 15 nodes
    num_nodes = 2 ** (depth + 1) - 1
    trees_per_block = 32               # 16-aligned; root level = 32 rows per block
    batch = 256                        # -> 8 grid blocks (>= 4 per v7x TC pair)

    key = jax.random.PRNGKey(0)
    k_h, k_w, k_b, k_t = jax.random.split(key, 4)

    # Upstream produces node-major (num_nodes, B, input_size) hidden states in
    # bf16 directly — the wrapper then adds no transpose / cast HBM round trip.
    h_nodes = jax.random.normal(
        k_h, (num_nodes, batch, input_size), dtype=jnp.float32).astype(jnp.bfloat16)

    # Deterministic parameter init (shapes from TreeCRF.__init__ with
    # pred_mode='single_h', need_pred_dense=False, bert_dim=0).
    w_std = (2.0 / (input_size + num_labels)) ** 0.5
    weight = jax.random.normal(k_w, (num_labels, input_size), dtype=jnp.float32) * w_std
    bias = jax.random.normal(k_b, (num_labels,), dtype=jnp.float32) * 0.01
    t_std = (2.0 / (num_labels + num_labels)) ** 0.5
    trans = jax.random.normal(k_t, (num_labels, num_labels), dtype=jnp.float32) * t_std

    # TODO(synk): golden_score / loss / viterbi decode operate on per-node Python
    # dicts (crf_cache) and dynamic tree topology; only forward() is kernelized.

    out = tree_crf_forward(h_nodes, weight, bias, trans,
                           depth=depth, trees_per_block=trees_per_block)
    out = jax.block_until_ready(out)

    # Reference uses the SAME bf16-quantized h / weight as the kernel's emission
    # GEMM, so the only kernel-vs-reference differences are accumulation order
    # and transcendental ULPs (all reductions in f32 on both sides).
    h_f32 = h_nodes.astype(jnp.float32)
    w_q = weight.astype(jnp.bfloat16).astype(jnp.float32)
    ref = jax.vmap(
        lambda h: tree_crf_reference(h, w_q, bias, trans, depth=depth),
        in_axes=1)(h_f32)                                   # (batch, num_labels)

    assert out.shape == (batch, num_labels)
    assert jnp.allclose(out, ref, rtol=1e-3, atol=1e-3), (out, ref)

    print("KERNEL_OK")
</pallas_src>

<mosaic_0001>
module attributes {stable_mosaic.version = 11 : i64} {
  func.func @tree_crf_kernel(%arg0: i32, %arg1: memref<15x32x32xbf16, #tpu.memory_space<vmem>>, %arg2: memref<32x128xbf16, #tpu.memory_space<vmem>>, %arg3: memref<1x128xf32, #tpu.memory_space<vmem>>, %arg4: memref<1x128xf32, #tpu.memory_space<vmem>>, %arg5: memref<128x128xf32, #tpu.memory_space<vmem>>, %arg6: memref<32x128xf32, #tpu.memory_space<vmem>>, %arg7: memref<480x128xf32, #tpu.memory_space<vmem>>) attributes {dimension_semantics = [#tpu.dimension_semantics<parallel>], iteration_bounds = array<i64: 8>, scalar_prefetch = 0 : i64, scratch_operands = 1 : i64, tpu.core_type = #tpu.core_type<tc>, window_params = [{transform_indices = @transform_0, window_bounds = array<i64: 15, 32, 32>}, {pipeline_mode = #tpu.pipeline_mode<synchronous>, transform_indices = @transform_1, window_bounds = array<i64: 32, 128>}, {pipeline_mode = #tpu.pipeline_mode<synchronous>, transform_indices = @transform_2, window_bounds = array<i64: 1, 128>}, {pipeline_mode = #tpu.pipeline_mode<synchronous>, transform_indices = @transform_3, window_bounds = array<i64: 1, 128>}, {pipeline_mode = #tpu.pipeline_mode<synchronous>, transform_indices = @transform_4, window_bounds = array<i64: 128, 128>}, {transform_indices = @transform_5, window_bounds = array<i64: 32, 128>}]} {
    %c0 = arith.constant 0 : index
    %c0_0 = arith.constant 0 : index
    %0 = vector.load %arg2[%c0, %c0_0] : memref<32x128xbf16, #tpu.memory_space<vmem>>, vector<32x128xbf16>
    %c0_1 = arith.constant 0 : index
    %c0_2 = arith.constant 0 : index
    %1 = vector.load %arg3[%c0_1, %c0_2] : memref<1x128xf32, #tpu.memory_space<vmem>>, vector<1x128xf32>
    %c0_3 = arith.constant 0 : index
    %c0_4 = arith.constant 0 : index
    %c0_5 = arith.constant 0 : index
    %2 = vector.load %arg1[%c0_3, %c0_4, %c0_5] : memref<15x32x32xbf16, #tpu.memory_space<vmem>>, vector<1x32x32xbf16>
    %3 = vector.shape_cast %2 : vector<1x32x32xbf16> to vector<32x32xbf16>
    %cst = arith.constant dense<0.000000e+00> : vector<32x128xf32>
    %4 = tpu.matmul %3, %0, %cst {dimension_numbers = #tpu.dot_dimension_numbers<[1], [0], [0], [1], [0, 0, 1, 1], [], []>} : vector<32x32xbf16>, vector<32x128xbf16>, vector<32x128xf32> -> vector<32x128xf32>
    %5 = vector.broadcast %1 : vector<1x128xf32> to vector<32x128xf32>
    %6 = arith.addf %4, %5 : vector<32x128xf32>
    %c0_6 = arith.constant 0 : index
    %c0_7 = arith.constant 0 : index
    %7 = vector.load %arg7[%c0_6, %c0_7] : memref<480x128xf32, #tpu.memory_space<vmem>>, vector<32x128xf32>
    tpu.vector_store %arg7[%c0_6, %c0_7], %6 {strides = array<i32>} : memref<480x128xf32, #tpu.memory_space<vmem>>, vector<32x128xf32>,
    %c1 = arith.constant 1 : index
    %c0_8 = arith.constant 0 : index
    %c0_9 = arith.constant 0 : index
    %8 = vector.load %arg1[%c1, %c0_8, %c0_9] : memref<15x32x32xbf16, #tpu.memory_space<vmem>>, vector<1x32x32xbf16>
    %9 = vector.shape_cast %8 : vector<1x32x32xbf16> to vector<32x32xbf16>
    %cst_10 = arith.constant dense<0.000000e+00> : vector<32x128xf32>
    %10 = tpu.matmul %9, %0, %cst_10 {dimension_numbers = #tpu.dot_dimension_numbers<[1], [0], [0], [1], [0, 0, 1, 1], [], []>} : vector<32x32xbf16>, vector<32x128xbf16>, vector<32x128xf32> -> vector<32x128xf32>
    %11 = vector.broadcast %1 : vector<1x128xf32> to vector<32x128xf32>
    %12 = arith.addf %10, %11 : vector<32x128xf32>
    %c32 = arith.constant 32 : index
    %c0_11 = arith.constant 0 : index
    %13 = vector.load %arg7[%c32, %c0_11] : memref<480x128xf32, #tpu.memory_space<vmem>>, vector<32x128xf32>
    tpu.vector_store %arg7[%c32, %c0_11], %12 {strides = array<i32>} : memref<480x128xf32, #tpu.memory_space<vmem>>, vector<32x128xf32>,
    %c2 = arith.constant 2 : index
    %c0_12 = arith.constant 0 : index
    %c0_13 = arith.constant 0 : index
    %14 = vector.load %arg1[%c2, %c0_12, %c0_13] : memref<15x32x32xbf16, #tpu.memory_space<vmem>>, vector<1x32x32xbf16>
    %15 = vector.shape_cast %14 : vector<1x32x32xbf16> to vector<32x32xbf16>
    %cst_14 = arith.constant dense<0.000000e+00> : vector<32x128xf32>
    %16 = tpu.matmul %15, %0, %cst_14 {dimension_numbers = #tpu.dot_dimension_numbers<[1], [0], [0], [1], [0, 0, 1, 1], [], []>} : vector<32x32xbf16>, vector<32x128xbf16>, vector<32x128xf32> -> vector<32x128xf32>
    %17 = vector.broadcast %1 : vector<1x128xf32> to vector<32x128xf32>
    %18 = arith.addf %16, %17 : vector<32x128xf32>
    %c64 = arith.constant 64 : index
    %c0_15 = arith.constant 0 : index
    %19 = vector.load %arg7[%c64, %c0_15] : memref<480x128xf32, #tpu.memory_space<vmem>>, vector<32x128xf32>
    tpu.vector_store %arg7[%c64, %c0_15], %18 {strides = array<i32>} : memref<480x128xf32, #tpu.memory_space<vmem>>, vector<32x128xf32>,
    %c3 = arith.constant 3 : index
    %c0_16 = arith.constant 0 : index
    %c0_17 = arith.constant 0 : index
    %20 = vector.load %arg1[%c3, %c0_16, %c0_17] : memref<15x32x32xbf16, #tpu.memory_space<vmem>>, vector<1x32x32xbf16>
    %21 = vector.shape_cast %20 : vector<1x32x32xbf16> to vector<32x32xbf16>
    %cst_18 = arith.constant dense<0.000000e+00> : vector<32x128xf32>
    %22 = tpu.matmul %21, %0, %cst_18 {dimension_numbers = #tpu.dot_dimension_numbers<[1], [0], [0], [1], [0, 0, 1, 1], [], []>} : vector<32x32xbf16>, vector<32x128xbf16>, vector<32x128xf32> -> vector<32x128xf32>
    %23 = vector.broadcast %1 : vector<1x128xf32> to vector<32x128xf32>
    %24 = arith.addf %22, %23 : vector<32x128xf32>
    %c96 = arith.constant 96 : index
    %c0_19 = arith.constant 0 : index
    %25 = vector.load %arg7[%c96, %c0_19] : memref<480x128xf32, #tpu.memory_space<vmem>>, vector<32x128xf32>
    tpu.vector_store %arg7[%c96, %c0_19], %24 {strides = array<i32>} : memref<480x128xf32, #tpu.memory_space<vmem>>, vector<32x128xf32>,
    %c4 = arith.constant 4 : index
    %c0_20 = arith.constant 0 : index
    %c0_21 = arith.constant 0 : index
    %26 = vector.load %arg1[%c4, %c0_20, %c0_21] : memref<15x32x32xbf16, #tpu.memory_space<vmem>>, vector<1x32x32xbf16>
    %27 = vector.shape_cast %26 : vector<1x32x32xbf16> to vector<32x32xbf16>
    %cst_22 = arith.constant dense<0.000000e+00> : vector<32x128xf32>
    %28 = tpu.matmul %27, %0, %cst_22 {dimension_numbers = #tpu.dot_dimension_numbers<[1], [0], [0], [1], [0, 0, 1, 1], [], []>} : vector<32x32xbf16>, vector<32x128xbf16>, vector<32x128xf32> -> vector<32x128xf32>
    %29 = vector.broadcast %1 : vector<1x128xf32> to vector<32x128xf32>
    %30 = arith.addf %28, %29 : vector<32x128xf32>
    %c128 = arith.constant 128 : index
    %c0_23 = arith.constant 0 : index
    %31 = vector.load %arg7[%c128, %c0_23] : memref<480x128xf32, #tpu.memory_space<vmem>>, vector<32x128xf32>
    tpu.vector_store %arg7[%c128, %c0_23], %30 {strides = array<i32>} : memref<480x128xf32, #tpu.memory_space<vmem>>, vector<32x128xf32>,
    %c5 = arith.constant 5 : index
    %c0_24 = arith.constant 0 : index
    %c0_25 = arith.constant 0 : index
    %32 = vector.load %arg1[%c5, %c0_24, %c0_25] : memref<15x32x32xbf16, #tpu.memory_space<vmem>>, vector<1x32x32xbf16>
    %33 = vector.shape_cast %32 : vector<1x32x32xbf16> to vector<32x32xbf16>
    %cst_26 = arith.constant dense<0.000000e+00> : vector<32x128xf32>
    %34 = tpu.matmul %33, %0, %cst_26 {dimension_numbers = #tpu.dot_dimension_numbers<[1], [0], [0], [1], [0, 0, 1, 1], [], []>} : vector<32x32xbf16>, vector<32x128xbf16>, vector<32x128xf32> -> vector<32x128xf32>
    %35 = vector.broadcast %1 : vector<1x128xf32> to vector<32x128xf32>
    %36 = arith.addf %34, %35 : vector<32x128xf32>
    %c160 = arith.constant 160 : index
    %c0_27 = arith.constant 0 : index
    %37 = vector.load %arg7[%c160, %c0_27] : memref<480x128xf32, #tpu.memory_space<vmem>>, vector<32x128xf32>
    tpu.vector_store %arg7[%c160, %c0_27], %36 {strides = array<i32>} : memref<480x128xf32, #tpu.memory_space<vmem>>, vector<32x128xf32>,
    %c6 = arith.constant 6 : index
    %c0_28 = arith.constant 0 : index
    %c0_29 = arith.constant 0 : index
    %38 = vector.load %arg1[%c6, %c0_28, %c0_29] : memref<15x32x32xbf16, #tpu.memory_space<vmem>>, vector<1x32x32xbf16>
    %39 = vector.shape_cast %38 : vector<1x32x32xbf16> to vector<32x32xbf16>
    %cst_30 = arith.constant dense<0.000000e+00> : vector<32x128xf32>
    %40 = tpu.matmul %39, %0, %cst_30 {dimension_numbers = #tpu.dot_dimension_numbers<[1], [0], [0], [1], [0, 0, 1, 1], [], []>} : vector<32x32xbf16>, vector<32x128xbf16>, vector<32x128xf32> -> vector<32x128xf32>
    %41 = vector.broadcast %1 : vector<1x128xf32> to vector<32x128xf32>
    %42 = arith.addf %40, %41 : vector<32x128xf32>
    %c192 = arith.constant 192 : index
    %c0_31 = arith.constant 0 : index
    %43 = vector.load %arg7[%c192, %c0_31] : memref<480x128xf32, #tpu.memory_space<vmem>>, vector<32x128xf32>
    tpu.vector_store %arg7[%c192, %c0_31], %42 {strides = array<i32>} : memref<480x128xf32, #tpu.memory_space<vmem>>, vector<32x128xf32>,
    %c7 = arith.constant 7 : index
    %c0_32 = arith.constant 0 : index
    %c0_33 = arith.constant 0 : index
    %44 = vector.load %arg1[%c7, %c0_32, %c0_33] : memref<15x32x32xbf16, #tpu.memory_space<vmem>>, vector<1x32x32xbf16>
    %45 = vector.shape_cast %44 : vector<1x32x32xbf16> to vector<32x32xbf16>
    %cst_34 = arith.constant dense<0.000000e+00> : vector<32x128xf32>
    %46 = tpu.matmul %45, %0, %cst_34 {dimension_numbers = #tpu.dot_dimension_numbers<[1], [0], [0], [1], [0, 0, 1, 1], [], []>} : vector<32x32xbf16>, vector<32x128xbf16>, vector<32x128xf32> -> vector<32x128xf32>
    %47 = vector.broadcast %1 : vector<1x128xf32> to vector<32x128xf32>
    %48 = arith.addf %46, %47 : vector<32x128xf32>
    %c224 = arith.constant 224 : index
    %c0_35 = arith.constant 0 : index
    %49 = vector.load %arg7[%c224, %c0_35] : memref<480x128xf32, #tpu.memory_space<vmem>>, vector<32x128xf32>
    tpu.vector_store %arg7[%c224, %c0_35], %48 {strides = array<i32>} : memref<480x128xf32, #tpu.memory_space<vmem>>, vector<32x128xf32>,
    %c8 = arith.constant 8 : index
    %c0_36 = arith.constant 0 : index
    %c0_37 = arith.constant 0 : index
    %50 = vector.load %arg1[%c8, %c0_36, %c0_37] : memref<15x32x32xbf16, #tpu.memory_space<vmem>>, vector<1x32x32xbf16>
    %51 = vector.shape_cast %50 : vector<1x32x32xbf16> to vector<32x32xbf16>
    %cst_38 = arith.constant dense<0.000000e+00> : vector<32x128xf32>
    %52 = tpu.matmul %51, %0, %cst_38 {dimension_numbers = #tpu.dot_dimension_numbers<[1], [0], [0], [1], [0, 0, 1, 1], [], []>} : vector<32x32xbf16>, vector<32x128xbf16>, vector<32x128xf32> -> vector<32x128xf32>
    %53 = vector.broadcast %1 : vector<1x128xf32> to vector<32x128xf32>
    %54 = arith.addf %52, %53 : vector<32x128xf32>
    %c256 = arith.constant 256 : index
    %c0_39 = arith.constant 0 : index
    %55 = vector.load %arg7[%c256, %c0_39] : memref<480x128xf32, #tpu.memory_space<vmem>>, vector<32x128xf32>
    tpu.vector_store %arg7[%c256, %c0_39], %54 {strides = array<i32>} : memref<480x128xf32, #tpu.memory_space<vmem>>, vector<32x128xf32>,
    %c9 = arith.constant 9 : index
    %c0_40 = arith.constant 0 : index
    %c0_41 = arith.constant 0 : index
    %56 = vector.load %arg1[%c9, %c0_40, %c0_41] : memref<15x32x32xbf16, #tpu.memory_space<vmem>>, vector<1x32x32xbf16>
    %57 = vector.shape_cast %56 : vector<1x32x32xbf16> to vector<32x32xbf16>
    %cst_42 = arith.constant dense<0.000000e+00> : vector<32x128xf32>
    %58 = tpu.matmul %57, %0, %cst_42 {dimension_numbers = #tpu.dot_dimension_numbers<[1], [0], [0], [1], [0, 0, 1, 1], [], []>} : vector<32x32xbf16>, vector<32x128xbf16>, vector<32x128xf32> -> vector<32x128xf32>
    %59 = vector.broadcast %1 : vector<1x128xf32> to vector<32x128xf32>
    %60 = arith.addf %58, %59 : vector<32x128xf32>
    %c288 = arith.constant 288 : index
    %c0_43 = arith.constant 0 : index
    %61 = vector.load %arg7[%c288, %c0_43] : memref<480x128xf32, #tpu.memory_space<vmem>>, vector<32x128xf32>
    tpu.vector_store %arg7[%c288, %c0_43], %60 {strides = array<i32>} : memref<480x128xf32, #tpu.memory_space<vmem>>, vector<32x128xf32>,
    %c10 = arith.constant 10 : index
    %c0_44 = arith.constant 0 : index
    %c0_45 = arith.constant 0 : index
    %62 = vector.load %arg1[%c10, %c0_44, %c0_45] : memref<15x32x32xbf16, #tpu.memory_space<vmem>>, vector<1x32x32xbf16>
    %63 = vector.shape_cast %62 : vector<1x32x32xbf16> to vector<32x32xbf16>
    %cst_46 = arith.constant dense<0.000000e+00> : vector<32x128xf32>
    %64 = tpu.matmul %63, %0, %cst_46 {dimension_numbers = #tpu.dot_dimension_numbers<[1], [0], [0], [1], [0, 0, 1, 1], [], []>} : vector<32x32xbf16>, vector<32x128xbf16>, vector<32x128xf32> -> vector<32x128xf32>
    %65 = vector.broadcast %1 : vector<1x128xf32> to vector<32x128xf32>
    %66 = arith.addf %64, %65 : vector<32x128xf32>
    %c320 = arith.constant 320 : index
    %c0_47 = arith.constant 0 : index
    %67 = vector.load %arg7[%c320, %c0_47] : memref<480x128xf32, #tpu.memory_space<vmem>>, vector<32x128xf32>
    tpu.vector_store %arg7[%c320, %c0_47], %66 {strides = array<i32>} : memref<480x128xf32, #tpu.memory_space<vmem>>, vector<32x128xf32>,
    %c11 = arith.constant 11 : index
    %c0_48 = arith.constant 0 : index
    %c0_49 = arith.constant 0 : index
    %68 = vector.load %arg1[%c11, %c0_48, %c0_49] : memref<15x32x32xbf16, #tpu.memory_space<vmem>>, vector<1x32x32xbf16>
    %69 = vector.shape_cast %68 : vector<1x32x32xbf16> to vector<32x32xbf16>
    %cst_50 = arith.constant dense<0.000000e+00> : vector<32x128xf32>
    %70 = tpu.matmul %69, %0, %cst_50 {dimension_numbers = #tpu.dot_dimension_numbers<[1], [0], [0], [1], [0, 0, 1, 1], [], []>} : vector<32x32xbf16>, vector<32x128xbf16>, vector<32x128xf32> -> vector<32x128xf32>
    %71 = vector.broadcast %1 : vector<1x128xf32> to vector<32x128xf32>
    %72 = arith.addf %70, %71 : vector<32x128xf32>
    %c352 = arith.constant 352 : index
    %c0_51 = arith.constant 0 : index
    %73 = vector.load %arg7[%c352, %c0_51] : memref<480x128xf32, #tpu.memory_space<vmem>>, vector<32x128xf32>
    tpu.vector_store %arg7[%c352, %c0_51], %72 {strides = array<i32>} : memref<480x128xf32, #tpu.memory_space<vmem>>, vector<32x128xf32>,
    %c12 = arith.constant 12 : index
    %c0_52 = arith.constant 0 : index
    %c0_53 = arith.constant 0 : index
    %74 = vector.load %arg1[%c12, %c0_52, %c0_53] : memref<15x32x32xbf16, #tpu.memory_space<vmem>>, vector<1x32x32xbf16>
    %75 = vector.shape_cast %74 : vector<1x32x32xbf16> to vector<32x32xbf16>
    %cst_54 = arith.constant dense<0.000000e+00> : vector<32x128xf32>
    %76 = tpu.matmul %75, %0, %cst_54 {dimension_numbers = #tpu.dot_dimension_numbers<[1], [0], [0], [1], [0, 0, 1, 1], [], []>} : vector<32x32xbf16>, vector<32x128xbf16>, vector<32x128xf32> -> vector<32x128xf32>
    %77 = vector.broadcast %1 : vector<1x128xf32> to vector<32x128xf32>
    %78 = arith.addf %76, %77 : vector<32x128xf32>
    %c384 = arith.constant 384 : index
    %c0_55 = arith.constant 0 : index
    %79 = vector.load %arg7[%c384, %c0_55] : memref<480x128xf32, #tpu.memory_space<vmem>>, vector<32x128xf32>
    tpu.vector_store %arg7[%c384, %c0_55], %78 {strides = array<i32>} : memref<480x128xf32, #tpu.memory_space<vmem>>, vector<32x128xf32>,
    %c13 = arith.constant 13 : index
    %c0_56 = arith.constant 0 : index
    %c0_57 = arith.constant 0 : index
    %80 = vector.load %arg1[%c13, %c0_56, %c0_57] : memref<15x32x32xbf16, #tpu.memory_space<vmem>>, vector<1x32x32xbf16>
    %81 = vector.shape_cast %80 : vector<1x32x32xbf16> to vector<32x32xbf16>
    %cst_58 = arith.constant dense<0.000000e+00> : vector<32x128xf32>
    %82 = tpu.matmul %81, %0, %cst_58 {dimension_numbers = #tpu.dot_dimension_numbers<[1], [0], [0], [1], [0, 0, 1, 1], [], []>} : vector<32x32xbf16>, vector<32x128xbf16>, vector<32x128xf32> -> vector<32x128xf32>
    %83 = vector.broadcast %1 : vector<1x128xf32> to vector<32x128xf32>
    %84 = arith.addf %82, %83 : vector<32x128xf32>
    %c416 = arith.constant 416 : index
    %c0_59 = arith.constant 0 : index
    %85 = vector.load %arg7[%c416, %c0_59] : memref<480x128xf32, #tpu.memory_space<vmem>>, vector<32x128xf32>
    tpu.vector_store %arg7[%c416, %c0_59], %84 {strides = array<i32>} : memref<480x128xf32, #tpu.memory_space<vmem>>, vector<32x128xf32>,
    %c14 = arith.constant 14 : index
    %c0_60 = arith.constant 0 : index
    %c0_61 = arith.constant 0 : index
    %86 = vector.load %arg1[%c14, %c0_60, %c0_61] : memref<15x32x32xbf16, #tpu.memory_space<vmem>>, vector<1x32x32xbf16>
    %87 = vector.shape_cast %86 : vector<1x32x32xbf16> to vector<32x32xbf16>
    %cst_62 = arith.constant dense<0.000000e+00> : vector<32x128xf32>
    %88 = tpu.matmul %87, %0, %cst_62 {dimension_numbers = #tpu.dot_dimension_numbers<[1], [0], [0], [1], [0, 0, 1, 1], [], []>} : vector<32x32xbf16>, vector<32x128xbf16>, vector<32x128xf32> -> vector<32x128xf32>
    %89 = vector.broadcast %1 : vector<1x128xf32> to vector<32x128xf32>
    %90 = arith.addf %88, %89 : vector<32x128xf32>
    %c448 = arith.constant 448 : index
    %c0_63 = arith.constant 0 : index
    %91 = vector.load %arg7[%c448, %c0_63] : memref<480x128xf32, #tpu.memory_space<vmem>>, vector<32x128xf32>
    tpu.vector_store %arg7[%c448, %c0_63], %90 {strides = array<i32>} : memref<480x128xf32, #tpu.memory_space<vmem>>, vector<32x128xf32>,
    %c0_64 = arith.constant 0 : index
    %c0_65 = arith.constant 0 : index
    %92 = vector.load %arg5[%c0_64, %c0_65] : memref<128x128xf32, #tpu.memory_space<vmem>>, vector<128x128xf32>
    %c0_66 = arith.constant 0 : index
    %c0_67 = arith.constant 0 : index
    %93 = vector.load %arg4[%c0_66, %c0_67] : memref<1x128xf32, #tpu.memory_space<vmem>>, vector<1x128xf32>
    %c96_68 = arith.constant 96 : index
    %c0_69 = arith.constant 0 : index
    %94 = vector.load %arg7[%c96_68, %c0_69] : memref<480x128xf32, #tpu.memory_space<vmem>>, vector<128x128xf32>
    %c224_70 = arith.constant 224 : index
    %c0_71 = arith.constant 0 : index
    %95 = vector.load %arg7[%c224_70, %c0_71] : memref<480x128xf32, #tpu.memory_space<vmem>>, vector<256x128xf32>
    %cst_72 = arith.constant dense<0xFF800000> : vector<256xf32>
    %96 = vector.multi_reduction <maximumf>, %95, %cst_72 [1] : vector<256x128xf32> to vector<256xf32>
    %97 = vector.shape_cast %96 : vector<256xf32> to vector<256x1xf32>
    %98 = vector.broadcast %97 : vector<256x1xf32> to vector<256x128xf32>
    %99 = arith.subf %95, %98 : vector<256x128xf32>
    %100 = math.exp %99 : vector<256x128xf32>
    %cst_73 = arith.constant dense<0.000000e+00> : vector<256x128xf32>
    %101 = tpu.matmul %100, %92, %cst_73 {dimension_numbers = #tpu.dot_dimension_numbers<[1], [0], [0], [1], [0, 0, 1, 1], [], []>} : vector<256x128xf32>, vector<128x128xf32>, vector<256x128xf32> -> vector<256x128xf32>
    %102 = math.log %101 : vector<256x128xf32>
    %103 = vector.broadcast %97 : vector<256x1xf32> to vector<256x128xf32>
    %104 = arith.addf %102, %103 : vector<256x128xf32>
    %105 = vector.broadcast %93 : vector<1x128xf32> to vector<256x128xf32>
    %106 = arith.addf %104, %105 : vector<256x128xf32>
    %107 = vector.extract_strided_slice %106 {offsets = [0, 0], sizes = [128, 128], strides = [1, 1]} : vector<256x128xf32> to vector<128x128xf32>
    %108 = arith.addf %94, %107 : vector<128x128xf32>
    %109 = vector.extract_strided_slice %106 {offsets = [128, 0], sizes = [128, 128], strides = [1, 1]} : vector<256x128xf32> to vector<128x128xf32>
    %110 = arith.addf %108, %109 : vector<128x128xf32>
    %c96_74 = arith.constant 96 : index
    %c0_75 = arith.constant 0 : index
    %111 = vector.load %arg7[%c96_74, %c0_75] : memref<480x128xf32, #tpu.memory_space<vmem>>, vector<128x128xf32>
    tpu.vector_store %arg7[%c96_74, %c0_75], %110 {strides = array<i32>} : memref<480x128xf32, #tpu.memory_space<vmem>>, vector<128x128xf32>,
    %c32_76 = arith.constant 32 : index
    %c0_77 = arith.constant 0 : index
    %112 = vector.load %arg7[%c32_76, %c0_77] : memref<480x128xf32, #tpu.memory_space<vmem>>, vector<64x128xf32>
    %c96_78 = arith.constant 96 : index
    %c0_79 = arith.constant 0 : index
    %113 = vector.load %arg7[%c96_78, %c0_79] : memref<480x128xf32, #tpu.memory_space<vmem>>, vector<128x128xf32>
    %cst_80 = arith.constant dense<0xFF800000> : vector<128xf32>
    %114 = vector.multi_reduction <maximumf>, %113, %cst_80 [1] : vector<128x128xf32> to vector<128xf32>
    %115 = vector.shape_cast %114 : vector<128xf32> to vector<128x1xf32>
    %116 = vector.broadcast %115 : vector<128x1xf32> to vector<128x128xf32>
    %117 = arith.subf %113, %116 : vector<128x128xf32>
    %118 = math.exp %117 : vector<128x128xf32>
    %cst_81 = arith.constant dense<0.000000e+00> : vector<128x128xf32>
    %119 = tpu.matmul %118, %92, %cst_81 {dimension_numbers = #tpu.dot_dimension_numbers<[1], [0], [0], [1], [0, 0, 1, 1], [], []>} : vector<128x128xf32>, vector<128x128xf32>, vector<128x128xf32> -> vector<128x128xf32>
    %120 = math.log %119 : vector<128x128xf32>
    %121 = vector.broadcast %115 : vector<128x1xf32> to vector<128x128xf32>
    %122 = arith.addf %120, %121 : vector<128x128xf32>
    %123 = vector.broadcast %93 : vector<1x128xf32> to vector<128x128xf32>
    %124 = arith.addf %122, %123 : vector<128x128xf32>
    %125 = vector.extract_strided_slice %124 {offsets = [0, 0], sizes = [64, 128], strides = [1, 1]} : vector<128x128xf32> to vector<64x128xf32>
    %126 = arith.addf %112, %125 : vector<64x128xf32>
    %127 = vector.extract_strided_slice %124 {offsets = [64, 0], sizes = [64, 128], strides = [1, 1]} : vector<128x128xf32> to vector<64x128xf32>
    %128 = arith.addf %126, %127 : vector<64x128xf32>
    %c32_82 = arith.constant 32 : index
    %c0_83 = arith.constant 0 : index
    %129 = vector.load %arg7[%c32_82, %c0_83] : memref<480x128xf32, #tpu.memory_space<vmem>>, vector<64x128xf32>
    tpu.vector_store %arg7[%c32_82, %c0_83], %128 {strides = array<i32>} : memref<480x128xf32, #tpu.memory_space<vmem>>, vector<64x128xf32>,
    %c0_84 = arith.constant 0 : index
    %c0_85 = arith.constant 0 : index
    %130 = vector.load %arg7[%c0_84, %c0_85] : memref<480x128xf32, #tpu.memory_space<vmem>>, vector<32x128xf32>
    %c32_86 = arith.constant 32 : index
    %c0_87 = arith.constant 0 : index
    %131 = vector.load %arg7[%c32_86, %c0_87] : memref<480x128xf32, #tpu.memory_space<vmem>>, vector<64x128xf32>
    %cst_88 = arith.constant dense<0xFF800000> : vector<64xf32>
    %132 = vector.multi_reduction <maximumf>, %131, %cst_88 [1] : vector<64x128xf32> to vector<64xf32>
    %133 = vector.shape_cast %132 : vector<64xf32> to vector<64x1xf32>
    %134 = vector.broadcast %133 : vector<64x1xf32> to vector<64x128xf32>
    %135 = arith.subf %131, %134 : vector<64x128xf32>
    %136 = math.exp %135 : vector<64x128xf32>
    %cst_89 = arith.constant dense<0.000000e+00> : vector<64x128xf32>
    %137 = tpu.matmul %136, %92, %cst_89 {dimension_numbers = #tpu.dot_dimension_numbers<[1], [0], [0], [1], [0, 0, 1, 1], [], []>} : vector<64x128xf32>, vector<128x128xf32>, vector<64x128xf32> -> vector<64x128xf32>
    %138 = math.log %137 : vector<64x128xf32>
    %139 = vector.broadcast %133 : vector<64x1xf32> to vector<64x128xf32>
    %140 = arith.addf %138, %139 : vector<64x128xf32>
    %141 = vector.broadcast %93 : vector<1x128xf32> to vector<64x128xf32>
    %142 = arith.addf %140, %141 : vector<64x128xf32>
    %143 = vector.extract_strided_slice %142 {offsets = [0, 0], sizes = [32, 128], strides = [1, 1]} : vector<64x128xf32> to vector<32x128xf32>
    %144 = arith.addf %130, %143 : vector<32x128xf32>
    %145 = vector.extract_strided_slice %142 {offsets = [32, 0], sizes = [32, 128], strides = [1, 1]} : vector<64x128xf32> to vector<32x128xf32>
    %146 = arith.addf %144, %145 : vector<32x128xf32>
    %c0_90 = arith.constant 0 : index
    %c0_91 = arith.constant 0 : index
    %147 = vector.load %arg6[%c0_90, %c0_91] : memref<32x128xf32, #tpu.memory_space<vmem>>, vector<32x128xf32>
    tpu.vector_store %arg6[%c0_90, %c0_91], %146 {strides = array<i32>} : memref<32x128xf32, #tpu.memory_space<vmem>>, vector<32x128xf32>,
    return
  }
  func.func @transform_0(%arg0: i32) -> (i32, i32, i32) {
    %c0_i32 = arith.constant 0 : i32
    %c0_i32_0 = arith.constant 0 : i32
    %c0_i32_1 = arith.constant 0 : i32
    return %c0_i32, %arg0, %c0_i32_0 : i32, i32, i32
  }
  func.func @transform_1(%arg0: i32) -> (i32, i32) {
    %c0_i32 = arith.constant 0 : i32
    %c0_i32_0 = arith.constant 0 : i32
    %c0_i32_1 = arith.constant 0 : i32
    return %c0_i32, %c0_i32_0 : i32, i32
  }
  func.func @transform_2(%arg0: i32) -> (i32, i32) {
    %c0_i32 = arith.constant 0 : i32
    %c0_i32_0 = arith.constant 0 : i32
    %c0_i32_1 = arith.constant 0 : i32
    return %c0_i32, %c0_i32_0 : i32, i32
  }
  func.func @transform_3(%arg0: i32) -> (i32, i32) {
    %c0_i32 = arith.constant 0 : i32
    %c0_i32_0 = arith.constant 0 : i32
    %c0_i32_1 = arith.constant 0 : i32
    return %c0_i32, %c0_i32_0 : i32, i32
  }
  func.func @transform_4(%arg0: i32) -> (i32, i32) {
    %c0_i32 = arith.constant 0 : i32
    %c0_i32_0 = arith.constant 0 : i32
    %c0_i32_1 = arith.constant 0 : i32
    return %c0_i32, %c0_i32_0 : i32, i32
  }
  func.func @transform_5(%arg0: i32) -> (i32, i32) {
    %c0_i32 = arith.constant 0 : i32
    %c0_i32_0 = arith.constant 0 : i32
    return %arg0, %c0_i32 : i32, i32
  }
}

</mosaic_0001>

<bundles_post_ra>
// kernel: tpu_custom_call.1
= control target key start
LH: loop header
LB: loop body
LE: loop exit
PB: predicated region body
PF: predicated region fallthrough
CT: control target
= control target key end

     0   :  { %10 = vsyncpa [#allocation5], 0  ;;  %s5069_s0 = inlined_call_operand.vmem [shape: bf16[15,256,32], index: 0, kind: input, shape index: {}]   ;;  %s5070_s1 = inlined_call_operand.vmem [shape: bf16[32,128], index: 1, kind: input, shape index: {}]   ;;  %s5071_s2 = inlined_call_operand.vmem [shape: f32[1,128], index: 2, kind: input, shape index: {}]   ;;  %s5072_s3 = inlined_call_operand.vmem [shape: f32[1,128], index: 3, kind: input, shape index: {}]   ;;  %s5073_s4 = inlined_call_operand.vmem [shape: f32[128,128], index: 4, kind: input, shape index: {}]   ;;  %s5074_s5 = inlined_call_operand.hbm [shape: f32[256,128], index: 5, kind: output, shape index: {}]  }
   0x1   :  { %12 = vsyncpa [#allocation5 + $0x1], 0  ;;  %s3980_s18 = smov 0   ;;  %s3982_s19 = smov 0  }
   0x2   :  { %s3984_s20 = smov 0   ;;  %s3986_s21 = smov 0  }
   0x3 LB: > { %s2888_s22 = sadd.s32 4294967295, %s3945_s21   ;;  %s2889_s23 = sadd.s32 4294967294, %s3945_s21   ;;  %s3945_s21 = sphi %s3986_s21, %s5135_s21   ;;  %s3941_s20 = sphi %s3984_s20, %s5134_s20   ;;  %s3937_s19 = sphi %s3982_s19, %s5133_s19   ;;  %s3933_s18 = sphi %s3980_s18, %s5132_s18  }
   0x4   : > { %s4003_s24 = sadd.s32 1, %s3945_s21   ;;  %s25_s25 = sadd.s32 1, %s3941_s20 }
   0x5   : > { %s22_s26 = ssub.s32 %s3945_s21, %s4003_s24  ;;  %p32_p0 = scmp.ne.s32.totalorder %s3941_s20, %s3937_s19 }
   0x6   : > { %p23_p1 = scmp.eq.s32.totalorder %s22_s26, 0  ;;  %p33_p2 = scmp.eq.s32.totalorder %s3945_s21, 0 }
   0x7   : > { %p146_p3 = scmp.eq.s32.totalorder %s2888_s22, 7  ;;  %p151_p4 = scmp.ne.s32.totalorder %s3937_s19, %s3933_s18 }
   0x8   : > { %s4016_s27 = scalar_select %p23_p1, %s3941_s20, %s25_s25  }
   0x9   : > { %p34_p5 = por %p33_p2, %p32_p0  ;;  %p4018_p6 = por %p146_p3, %p32_p0 }
   0xa   : > { %p152_p7 = scmp.eq.s32.totalorder %s2889_s23, 7  ;;  %p2891_p9 = scmp.ge.s32.totalorder %s3945_s21, 8 }
   0xc   : > { %p4022_p8 = por %p152_p7, %p151_p4  ;;  %180 = sbr.rel (%p2891_p9) target bundleno = 38 (0x26), region = 32 }
  0x13   : > { %183 = sbr.rel (!%p34_p5) target bundleno = 38 (0x26), region = 36  ;;  %s185_s30 = sand.u32 (%p34_p5), 1, %s3941_s20  }
  0x14   : > { %s3021_s6 = sshll.u32 (%p34_p5), %s3945_s21, 4  ;;  %s3583_s7 = smul.u32 (%p34_p5), 240, %s185_s30 }
  0x15   : > { %s4032_s10 = scalar_lea.vmem (%p34_p5), %s5069_s0, %s3021_s6 }
  0x16   : > { %v206_v0 = vld [vmem:[%s4032_s10] sm:$0xff] (%p34_p5)   ;;  %v210_v1 = vld [vmem:[%s4032_s10 + $0x8] sm:$0xff] (%p34_p5)   ;;  %s4040_s11 = scalar_lea.vmem (%p34_p5), [#allocation3], %s3583_s7 }
  0x17   : > { %v214_v2 = vld [vmem:[%s4032_s10 + $0x80] sm:$0xff] (%p34_p5)   ;;  %v218_v3 = vld [vmem:[%s4032_s10 + $0x88] sm:$0xff] (%p34_p5)   ;;  %207 = vst [vmem:[%s4040_s11] sm:$0xff] (%p34_p5), %v206_v0   ;;  %211 = vst [vmem:[%s4040_s11 + $0x8] sm:$0xff] (%p34_p5), %v210_v1  }
  0x18   : > { %v222_v4 = vld [vmem:[%s4032_s10 + $0x100] sm:$0xff] (%p34_p5)   ;;  %v226_v5 = vld [vmem:[%s4032_s10 + $0x108] sm:$0xff] (%p34_p5)   ;;  %215 = vst [vmem:[%s4040_s11 + $0x10] sm:$0xff] (%p34_p5), %v214_v2   ;;  %219 = vst [vmem:[%s4040_s11 + $0x18] sm:$0xff] (%p34_p5), %v218_v3  }
  0x19   : > { %223 = vst [vmem:[%s4040_s11 + $0x20] sm:$0xff] (%p34_p5), %v222_v4   ;;  %227 = vst [vmem:[%s4040_s11 + $0x28] sm:$0xff] (%p34_p5), %v226_v5   ;;  %v230_v6 = vld [vmem:[%s4032_s10 + $0x180] sm:$0xff] (%p34_p5)   ;;  %v234_v7 = vld [vmem:[%s4032_s10 + $0x188] sm:$0xff] (%p34_p5)  }
  0x1a   : > { %v238_v8 = vld [vmem:[%s4032_s10 + $0x200] sm:$0xff]   ;;  %231 = vst [vmem:[%s4040_s11 + $0x30] sm:$0xff] %v230_v6   ;;  %235 = vst [vmem:[%s4040_s11 + $0x38] sm:$0xff] %v234_v7   ;;  %v242_v9 = vld [vmem:[%s4032_s10 + $0x208] sm:$0xff]  }
  0x1b   : > { %239 = vst [vmem:[%s4040_s11 + $0x40] sm:$0xff] %v238_v8   ;;  %v246_v10 = vld [vmem:[%s4032_s10 + $0x280] sm:$0xff]   ;;  %v250_v11 = vld [vmem:[%s4032_s10 + $0x288] sm:$0xff]   ;;  %243 = vst [vmem:[%s4040_s11 + $0x48] sm:$0xff] %v242_v9  }
  0x1c   : > { %247 = vst [vmem:[%s4040_s11 + $0x50] sm:$0xff] %v246_v10   ;;  %251 = vst [vmem:[%s4040_s11 + $0x58] sm:$0xff] %v250_v11   ;;  %v254_v12 = vld [vmem:[%s4032_s10 + $0x300] sm:$0xff]   ;;  %v258_v13 = vld [vmem:[%s4032_s10 + $0x308] sm:$0xff]  }
  0x1d   : > { %v262_v14 = vld [vmem:[%s4032_s10 + $0x380] sm:$0xff]   ;;  %255 = vst [vmem:[%s4040_s11 + $0x60] sm:$0xff] %v254_v12   ;;  %259 = vst [vmem:[%s4040_s11 + $0x68] sm:$0xff] %v258_v13   ;;  %v266_v15 = vld [vmem:[%s4032_s10 + $0x388] sm:$0xff]  }
  0x1e   : > { %263 = vst [vmem:[%s4040_s11 + $0x70] sm:$0xff] %v262_v14   ;;  %v270_v16 = vld [vmem:[%s4032_s10 + $0x400] sm:$0xff]   ;;  %v274_v17 = vld [vmem:[%s4032_s10 + $0x408] sm:$0xff]   ;;  %267 = vst [vmem:[%s4040_s11 + $0x78] sm:$0xff] %v266_v15  }
  0x1f   : > { %271 = vst [vmem:[%s4040_s11 + $0x80] sm:$0xff] %v270_v16   ;;  %275 = vst [vmem:[%s4040_s11 + $0x88] sm:$0xff] %v274_v17   ;;  %v278_v18 = vld [vmem:[%s4032_s10 + $0x480] sm:$0xff]   ;;  %v282_v19 = vld [vmem:[%s4032_s10 + $0x488] sm:$0xff]  }
  0x20   : > { %v286_v20 = vld [vmem:[%s4032_s10 + $0x500] sm:$0xff]   ;;  %279 = vst [vmem:[%s4040_s11 + $0x90] sm:$0xff] %v278_v18   ;;  %283 = vst [vmem:[%s4040_s11 + $0x98] sm:$0xff] %v282_v19   ;;  %v290_v21 = vld [vmem:[%s4032_s10 + $0x508] sm:$0xff]  }
  0x21   : > { %287 = vst [vmem:[%s4040_s11 + $0xa0] sm:$0xff] %v286_v20   ;;  %v294_v22 = vld [vmem:[%s4032_s10 + $0x580] sm:$0xff]   ;;  %v298_v23 = vld [vmem:[%s4032_s10 + $0x588] sm:$0xff]   ;;  %291 = vst [vmem:[%s4040_s11 + $0xa8] sm:$0xff] %v290_v21  }
  0x22   : > { %295 = vst [vmem:[%s4040_s11 + $0xb0] sm:$0xff] %v294_v22   ;;  %299 = vst [vmem:[%s4040_s11 + $0xb8] sm:$0xff] %v298_v23   ;;  %v302_v24 = vld [vmem:[%s4032_s10 + $0x600] sm:$0xff]   ;;  %v306_v25 = vld [vmem:[%s4032_s10 + $0x608] sm:$0xff]  }
  0x23   : > { %v310_v26 = vld [vmem:[%s4032_s10 + $0x680] sm:$0xff]   ;;  %303 = vst [vmem:[%s4040_s11 + $0xc0] sm:$0xff] %v302_v24   ;;  %307 = vst [vmem:[%s4040_s11 + $0xc8] sm:$0xff] %v306_v25   ;;  %v314_v27 = vld [vmem:[%s4032_s10 + $0x688] sm:$0xff]  }
  0x24   : > { %311 = vst [vmem:[%s4040_s11 + $0xd0] sm:$0xff] %v310_v26   ;;  %v318_v28 = vld [vmem:[%s4032_s10 + $0x700] sm:$0xff]   ;;  %v322_v29 = vld [vmem:[%s4032_s10 + $0x708] sm:$0xff]   ;;  %315 = vst [vmem:[%s4040_s11 + $0xd8] sm:$0xff] %v314_v27  }
  0x25   : > { %319 = vst [vmem:[%s4040_s11 + $0xe0] sm:$0xff] %v318_v28   ;;  %323 = vst [vmem:[%s4040_s11 + $0xe8] sm:$0xff] %v322_v29  }
  0x26 PF: > { %p2894_p10 = scmp.ge.s32.totalorder %s3945_s21, 1  ;;  %p467_p11 = scmp.lt.s32.totalorder %s3945_s21, 9 }
  0x28   : > { %p468_p12 = pnand %p2894_p10, %p467_p11 }
  0x2a   : > { %471 = sbr.rel (%p468_p12) target bundleno = 1545 (0x609), region = 77 }
  0x31   : > { %v4101_v30 = vld [vmem:[%s5070_s1] sm:$0xff]   ;;  %s4104_s14 = sand.u32 1, %s3937_s19   ;;  %v4109_v31 = vld [vmem:[%s5070_s1 + $0x8] sm:$0xff]   ;;  %vm541_vm0 = vcmask 261120   ;;  %v1639_v0 = vld [vmem:[%s5073_s4 + $0x10] sm:$0xff]  ;;  %s3022_s12 = sshll.u32 %s2888_s22, 9 }
  0x32   : > { %s3584_s17 = smul.u32 240, %s4104_s14  ;;  %3187 = vmatprep.subr.bf16.mxu0 %v4101_v30  ;;  %3195 = vmatprep.subr.bf16.mxu1 %v4101_v30  ;;  %v1637_v62 = vld [vmem:[%s5073_s4] sm:$0xff]  ;;  %v1638_v63 = vld [vmem:[%s5073_s4 + $0x8] sm:$0xff]  ;;  %v1640_v2 = vld [vmem:[%s5073_s4 + $0x18] sm:$0xff]  ;;  %s2895_s11 = sshll.u32 %s4104_s14, 5 }
  0x33   : > { %3188 = vmatpush3.bf16.msra.mxu0 %v4101_v30  ;;  %3196 = vmatpush3.bf16.msra.mxu1 %v4101_v30  ;;  %v4243_v1 = vpack.c.bf16 %v1638_v63, %v1637_v62  ;;  %v4248_v3 = vpack.c.bf16 %v1640_v2, %v1639_v0  ;;  %v1641_v4 = vld [vmem:[%s5073_s4 + $0x20] sm:$0xff]  ;;  %v1642_v5 = vld [vmem:[%s5073_s4 + $0x28] sm:$0xff]  ;;  %s500_s13 = scalar_lea.vmem [#allocation4], %s2895_s11  ;;  %s2808_s22 = scalar_lea.sflag [#allocation5], %s4104_s14 }
  0x34   : > { %3189 = vmatprep.subr.bf16.mxu0 %v4109_v31  ;;  %3197 = vmatprep.subr.bf16.mxu1 %v4109_v31  ;;  %s4118_s23 = scalar_lea.vmem [#allocation3], %s3584_s17  ;;  %v4261_v6 = vpack.c.bf16 %v1642_v5, %v1641_v4  ;;  %v4273_v7 = vld [vmem:[%s5071_s2] ss:$0 sm:$0xff]  ;;  %s2821_s15 = sshll.u32 %s500_s13, 4  ;;  %s5026_s15 = int_to_ptr.vmem [resolvable:$true] %s2821_s15 }
  0x35   : > { %v3628_v32 = vld [vmem:[%s4118_s23] sm:$0xff]   ;;  %v3629_v33 = vld [vmem:[%s4118_s23 + $0x10] sm:$0xff]   ;;  %v3630_v34 = vld [vmem:[%s4118_s23 + $0x8] sm:$0xff]   ;;  %5092 = vst [vmem:[#allocation7_spill] sm:$0xff] %v4243_v1  ;;  %s3883_s25 = scalar_lea.vmem %s5026_s15, 512  ;;  %s3947_s26 = smov [#allocation4]  }
  0x36   : > { %3191 = vmatprep.mubr.msk.bf16.mxu0 %vm541_vm0, %v3628_v32  ;;  %v3631_v35 = vld [vmem:[%s4118_s23 + $0x18] sm:$0xff]   ;;  %3199 = vmatprep.mubr.msk.bf16.mxu1 %vm541_vm0, %v3629_v33  ;;  %v3632_v36 = vld [vmem:[%s4118_s23 + $0x20] sm:$0xff]   ;;  %v3633_v37 = vld [vmem:[%s4118_s23 + $0x30] sm:$0xff]   ;;  %5093 = vst [vmem:[#allocation8_spill] sm:$0xff] %v4248_v3  ;;  %p3884_p13 = scmp.ne.s32.totalorder %s5026_s15, %s3883_s25  ;;  %s3887_s30 = sshll.u32 %s3947_s26, 4  ;;  %s3888_s30 = int_to_ptr.vmem [resolvable:$false] %s3887_s30 }
  0x37   : > { %3190 = vmatpush3.bf16.msra.mxu0 %v4109_v31  ;;  %3198 = vmatpush3.bf16.msra.mxu1 %v4109_v31  ;;  %v3634_v38 = vld [vmem:[%s4118_s23 + $0x28] sm:$0xff]   ;;  %v3635_v39 = vld [vmem:[%s4118_s23 + $0x38] sm:$0xff]   ;;  %v3636_v40 = vld [vmem:[%s4118_s23 + $0x40] sm:$0xff]   ;;  %5094 = vst [vmem:[#allocation9_spill] sm:$0xff] %v4261_v6  ;;  %s3889_s6 = scalar_lea.vmem %s3888_s30, 1024  ;;  %p3890_p2 = scmp.lt.s32.totalorder %s5026_s15, %s3888_s30 }
  0x38   : > { %3203 = vmatprep.subr.bf16.mxu0 %v4101_v30  ;;  %3211 = vmatprep.subr.bf16.mxu1 %v4101_v30  ;;  %v3637_v41 = vld [vmem:[%s4118_s23 + $0x50] sm:$0xff]   ;;  %v3638_v42 = vld [vmem:[%s4118_s23 + $0x48] sm:$0xff]   ;;  %v3639_v43 = vld [vmem:[%s4118_s23 + $0x58] sm:$0xff]   ;;  %p3885_p0 = pnand %p3884_p13, %p4018_p6  ;;  %p3891_p3 = scmp.lt.s32.totalorder %s3889_s6, %s3883_s25 }
  0x39   : > { %v3640_v44 = vld [vmem:[%s4118_s23 + $0x60] sm:$0xff]   ;;  %v3641_v45 = vld [vmem:[%s4118_s23 + $0x70] sm:$0xff]   ;;  %v3642_v46 = vld [vmem:[%s4118_s23 + $0x68] sm:$0xff]  }
  0x3a   : > { %3192 = vmatmul.mubr.msk.bf16.vlgmr.msra.gmra.mrb[0].mxu0 %vm541_vm0, %v3630_v34  ;;  %3200 = vmatmul.mubr.msk.bf16.vlgmr.msra.gmra.mrb[0].mxu1 %vm541_vm0, %v3631_v35  ;;  %v3643_v47 = vld [vmem:[%s4118_s23 + $0x78] sm:$0xff]   ;;  %v3644_v48 = vld [vmem:[%s4118_s23 + $0x80] sm:$0xff]   ;;  %v3646_v49 = vld [vmem:[%s4118_s23 + $0x90] sm:$0xff]   ;;  %p3886_p1 = pneg %p3885_p0  ;;  %p3892_p4 = por %p3891_p3, %p3890_p2 }
  0x3b   : > { %3204 = vmatpush3.bf16.msra.mxu0 %v4101_v30  ;;  %3212 = vmatpush3.bf16.msra.mxu1 %v4101_v30  ;;  %v3645_v50 = vld [vmem:[%s4118_s23 + $0x88] sm:$0xff]   ;;  %v3647_v51 = vld [vmem:[%s4118_s23 + $0x98] sm:$0xff]   ;;  %v3648_v52 = vld [vmem:[%s4118_s23 + $0xa0] sm:$0xff]  }
  0x3c   : > { %3205 = vmatprep.subr.bf16.mxu0 %v4109_v31  ;;  %3213 = vmatprep.subr.bf16.mxu1 %v4109_v31  ;;  %v3650_v53 = vld [vmem:[%s4118_s23 + $0xb0] sm:$0xff]   ;;  %v3649_v54 = vld [vmem:[%s4118_s23 + $0xa8] sm:$0xff]   ;;  %v3652_v55 = vld [vmem:[%s4118_s23 + $0xc0] sm:$0xff]   ;;  %p3893_p5 = pnand %p3892_p4, %p3886_p1 }
  0x3d   : > { %3207 = vmatprep.mubr.msk.bf16.mxu0 %vm541_vm0, %v3632_v36  ;;  %3215 = vmatprep.mubr.msk.bf16.mxu1 %vm541_vm0, %v3633_v37  ;;  %v3651_v56 = vld [vmem:[%s4118_s23 + $0xb8] sm:$0xff]   ;;  %v3654_v57 = vld [vmem:[%s4118_s23 + $0xd0] sm:$0xff]   ;;  %v3653_v58 = vld [vmem:[%s4118_s23 + $0xc8] sm:$0xff]  }
  0x3e   : > { %v3656_v59 = vld [vmem:[%s4118_s23 + $0xe0] sm:$0xff]   ;;  %v3655_v60 = vld [vmem:[%s4118_s23 + $0xd8] sm:$0xff]   ;;  %v3657_v61 = vld [vmem:[%s4118_s23 + $0xe8] sm:$0xff]   ;;  %s5024_s23 = scalar_lea.hbm %s5074_s5, %s3022_s12 }
  0x3f   : > { %3206 = vmatpush3.bf16.msra.mxu0 %v4109_v31  ;;  %3214 = vmatpush3.bf16.msra.mxu1 %v4109_v31 }
  0x40   : > { %3219 = vmatprep.subr.bf16.mxu0 %v4101_v30  ;;  %3227 = vmatprep.subr.bf16.mxu1 %v4101_v30 }
  0x42   : > { %3208 = vmatmul.mubr.msk.bf16.vlgmr.msra.gmra.mrb[4].mxu0 %vm541_vm0, %v3634_v38  ;;  %3216 = vmatmul.mubr.msk.bf16.vlgmr.msra.gmra.mrb[4].mxu1 %vm541_vm0, %v3635_v39 }
  0x43   : > { %3220 = vmatpush3.bf16.msra.mxu0 %v4101_v30  ;;  %3228 = vmatpush3.bf16.msra.mxu1 %v4101_v30 }
  0x44   : > { %3221 = vmatprep.subr.bf16.mxu0 %v4109_v31  ;;  %3229 = vmatprep.subr.bf16.mxu1 %v4109_v31 }
  0x45   : > { %3223 = vmatprep.mubr.msk.bf16.mxu0 %vm541_vm0, %v3636_v40  ;;  %3231 = vmatprep.mubr.msk.bf16.mxu1 %vm541_vm0, %v3637_v41 }
  0x47   : > { %3222 = vmatpush3.bf16.msra.mxu0 %v4109_v31  ;;  %3230 = vmatpush3.bf16.msra.mxu1 %v4109_v31 }
  0x48   : > { %3235 = vmatprep.subr.bf16.mxu0 %v4101_v30  ;;  %3243 = vmatprep.subr.bf16.mxu1 %v4101_v30 }
  0x4a   : > { %3224 = vmatmul.mubr.msk.bf16.vlgmr.msra.gmra.mrb[8].mxu0 %vm541_vm0, %v3638_v42  ;;  %3232 = vmatmul.mubr.msk.bf16.vlgmr.msra.gmra.mrb[8].mxu1 %vm541_vm0, %v3639_v43 }
  0x4b   : > { %3236 = vmatpush3.bf16.msra.mxu0 %v4101_v30  ;;  %3244 = vmatpush3.bf16.msra.mxu1 %v4101_v30 }
  0x4c   : > { %3237 = vmatprep.subr.bf16.mxu0 %v4109_v31  ;;  %3245 = vmatprep.subr.bf16.mxu1 %v4109_v31 }
  0x4d   : > { %3239 = vmatprep.mubr.msk.bf16.mxu0 %vm541_vm0, %v3640_v44  ;;  %3247 = vmatprep.mubr.msk.bf16.mxu1 %vm541_vm0, %v3641_v45 }
  0x4f   : > { %3238 = vmatpush3.bf16.msra.mxu0 %v4109_v31  ;;  %3246 = vmatpush3.bf16.msra.mxu1 %v4109_v31 }
  0x50   : > { %3251 = vmatprep.subr.bf16.mxu0 %v4101_v30  ;;  %3259 = vmatprep.subr.bf16.mxu1 %v4101_v30 }
  0x52   : > { %3240 = vmatmul.mubr.msk.bf16.vlgmr.msra.gmra.mrb[12].mxu0 %vm541_vm0, %v3642_v46  ;;  %3248 = vmatmul.mubr.msk.bf16.vlgmr.msra.gmra.mrb[12].mxu1 %vm541_vm0, %v3643_v47 }
  0x53   : > { %3252 = vmatpush3.bf16.msra.mxu0 %v4101_v30  ;;  %3255 = vmatprep.mubr.msk.bf16.mxu0 %vm541_vm0, %v3644_v48 }
  0x54   : > { %3253 = vmatprep.subr.bf16.mxu0 %v4109_v31  ;;  %3260 = vmatpush3.bf16.msra.mxu1 %v4101_v30 }
  0x55   : > { %3261 = vmatprep.subr.bf16.mxu1 %v4109_v31  ;;  %3263 = vmatprep.mubr.msk.bf16.mxu1 %vm541_vm0, %v3646_v49 }
  0x57   : > { %3254 = vmatpush3.bf16.msra.mxu0 %v4109_v31 }
  0x58   : > { %3262 = vmatpush3.bf16.msra.mxu1 %v4109_v31  ;;  %3267 = vmatprep.subr.bf16.mxu0 %v4101_v30 }
  0x59   : > { %3275 = vmatprep.subr.bf16.mxu1 %v4101_v30 }
  0x5a   : > { %3256 = vmatmul.mubr.msk.bf16.vlgmr.msra.gmra.mrb[16].mxu0 %vm541_vm0, %v3645_v50 }
  0x5b   : > { %3264 = vmatmul.mubr.msk.bf16.vlgmr.msra.gmra.mrb[16].mxu1 %vm541_vm0, %v3647_v51  ;;  %3268 = vmatpush3.bf16.msra.mxu0 %v4101_v30 }
  0x5c   : > { %3269 = vmatprep.subr.bf16.mxu0 %v4109_v31  ;;  %3271 = vmatprep.mubr.msk.bf16.mxu0 %vm541_vm0, %v3648_v52 }
  0x5d   : > { %3276 = vmatpush3.bf16.msra.mxu1 %v4101_v30  ;;  %3279 = vmatprep.mubr.msk.bf16.mxu1 %vm541_vm0, %v3650_v53 }
  0x5e   : > { %3277 = vmatprep.subr.bf16.mxu1 %v4109_v31 }
  0x5f   : > { %3270 = vmatpush3.bf16.msra.mxu0 %v4109_v31 }
  0x60   : > { %3283 = vmatprep.subr.bf16.mxu0 %v4101_v30 }
  0x61   : > { %3278 = vmatpush3.bf16.msra.mxu1 %v4109_v31 }
  0x62   : > { %3272 = vmatmul.mubr.msk.bf16.vlgmr.msra.gmra.mrb[20].mxu0 %vm541_vm0, %v3649_v54  ;;  %3291 = vmatprep.subr.bf16.mxu1 %v4101_v30 }
  0x63   : > { %3284 = vmatpush3.bf16.msra.mxu0 %v4101_v30  ;;  %3287 = vmatprep.mubr.msk.bf16.mxu0 %vm541_vm0, %v3652_v55 }
  0x64   : > { %3280 = vmatmul.mubr.msk.bf16.vlgmr.msra.gmra.mrb[20].mxu1 %vm541_vm0, %v3651_v56  ;;  %3285 = vmatprep.subr.bf16.mxu0 %v4109_v31 }
  0x65   : > { %3292 = vmatpush3.bf16.msra.mxu1 %v4101_v30  ;;  %3295 = vmatprep.mubr.msk.bf16.mxu1 %vm541_vm0, %v3654_v57 }
  0x66   : > { %3293 = vmatprep.subr.bf16.mxu1 %v4109_v31 }
  0x67   : > { %3286 = vmatpush3.bf16.msra.mxu0 %v4109_v31 }
  0x68   : > { %3299 = vmatprep.subr.bf16.mxu0 %v4101_v30 }
  0x69   : > { %3294 = vmatpush3.bf16.msra.mxu1 %v4109_v31 }
  0x6a   : > { %3288 = vmatmul.mubr.msk.bf16.vlgmr.msra.gmra.mrb[24].mxu0 %vm541_vm0, %v3653_v58  ;;  %3488 = vmatprep.subr.bf16.mxu1 %v4243_v1 }
  0x6b   : > { %3300 = vmatpush3.bf16.msra.mxu0 %v4101_v30  ;;  %3303 = vmatprep.mubr.msk.bf16.mxu0 %vm541_vm0, %v3656_v59 }
  0x6c   : > { %3296 = vmatmul.mubr.msk.bf16.vlgmr.msra.gmra.mrb[24].mxu1 %vm541_vm0, %v3655_v60  ;;  %3301 = vmatprep.subr.bf16.mxu0 %v4109_v31 }
  0x6d   : > { %3490 = vmatpush3.bf16.msra.mxu1 %v4243_v1 }
  0x6e   : > { %3492 = vmatprep.subr.bf16.mxu1 %v4248_v3 }
  0x6f   : > { %3302 = vmatpush3.bf16.msra.mxu0 %v4109_v31 }
  0x70   : > { %3520 = vmatprep.subr.bf16.mxu0 %v4243_v1 }
  0x71   : > { %3494 = vmatpush3.bf16.msra.mxu1 %v4248_v3 }
  0x72   : > { %3304 = vmatmul.mubr.msk.bf16.vlgmr.msra.gmra.mrb[28].mxu0 %vm541_vm0, %v3657_v61  ;;  %3496 = vmatprep.subr.bf16.mxu1 %v4261_v6 }
  0x73   : > { %3522 = vmatpush3.bf16.msra.mxu0 %v4243_v1 }
  0x74   : > { %3524 = vmatprep.subr.bf16.mxu0 %v4248_v3 }
  0x75   : > { %3498 = vmatpush3.bf16.msra.mxu1 %v4261_v6 }
  0x77   : > { %3526 = vmatpush3.bf16.msra.mxu0 %v4248_v3 }
  0x78   : > { %3528 = vmatprep.subr.bf16.mxu0 %v4261_v6 }
  0x7b   : > { %3530 = vmatpush3.bf16.msra.mxu0 %v4261_v6 }
 0x10d   : > { %v3193_v8 = vpop.f32.mrb[0].mxu0  ;;  %v3201_v9 = vpop.f32.mrb[0].mxu1 }
 0x10e   : > { %v4276_v10 = vadd.f32 %v3193_v8, %v4273_v7  ;;  %v4279_v11 = vadd.f32 %v3201_v9, %v4273_v7  ;;  %v582_v12 = vpop.f32.mrb[1].mxu0  ;;  %v656_v13 = vpop.f32.mrb[1].mxu1 }
 0x10f   : > { %v4282_v14 = vadd.f32 %v4273_v7, %v582_v12  ;;  %v4285_v15 = vadd.f32 %v4273_v7, %v656_v13  ;;  %v3194_v16 = vpop.f32.mrb[2].mxu0  ;;  %v3202_v17 = vpop.f32.mrb[2].mxu1 }
 0x110   : > { %5095 = vst [vmem:[#allocation10_spill] sm:$0xff] %v4276_v10  ;;  %5096 = vst [vmem:[#allocation11_spill] sm:$0xff] %v4279_v11  ;;  %v4288_v18 = vadd.f32 %v3194_v16, %v4273_v7  ;;  %v4291_v19 = vadd.f32 %v3202_v17, %v4273_v7  ;;  %v585_v20 = vpop.f32.mrb[3].mxu0  ;;  %v659_v21 = vpop.f32.mrb[3].mxu1 }
 0x111   : > { %5097 = vst [vmem:[#allocation12_spill] sm:$0xff] %v4282_v14  ;;  %5098 = vst [vmem:[#allocation13_spill] sm:$0xff] %v4285_v15  ;;  %v4294_v22 = vadd.f32 %v4273_v7, %v585_v20  ;;  %v4297_v23 = vadd.f32 %v4273_v7, %v659_v21 }
 0x112   : > { %5099 = vst [vmem:[#allocation14_spill] sm:$0xff] %v4288_v18  ;;  %5100 = vst [vmem:[#allocation15_spill] sm:$0xff] %v4291_v19 }
 0x113   : > { %5101 = vst [vmem:[#allocation16_spill] sm:$0xff] %v4294_v22  ;;  %5102 = vst [vmem:[#allocation17_spill] sm:$0xff] %v4297_v23 }
 0x115   : > { %v3209_v24 = vpop.f32.mrb[4].mxu0  ;;  %v3217_v25 = vpop.f32.mrb[4].mxu1 }
 0x116   : > { %v4300_v26 = vadd.f32 %v3209_v24, %v4273_v7  ;;  %v4303_v27 = vadd.f32 %v3217_v25, %v4273_v7  ;;  %v730_v28 = vpop.f32.mrb[5].mxu0  ;;  %v804_v29 = vpop.f32.mrb[5].mxu1 }
 0x117   : > { %v4306_v30 = vadd.f32 %v4273_v7, %v730_v28  ;;  %v4309_v31 = vadd.f32 %v4273_v7, %v804_v29  ;;  %v3210_v32 = vpop.f32.mrb[6].mxu0  ;;  %v3218_v33 = vpop.f32.mrb[6].mxu1 }
 0x118   : > { %5103 = vst [vmem:[#allocation18_spill] sm:$0xff] %v4300_v26  ;;  %v4312_v34 = vadd.f32 %v3210_v32, %v4273_v7  ;;  %v4315_v35 = vadd.f32 %v3218_v33, %v4273_v7  ;;  %v733_v36 = vpop.f32.mrb[7].mxu0  ;;  %v807_v37 = vpop.f32.mrb[7].mxu1 }
 0x119   : > { %5104 = vst [vmem:[#allocation19_spill] sm:$0xff] %v4306_v30  ;;  %v4318_v38 = vadd.f32 %v4273_v7, %v733_v36  ;;  %v4321_v39 = vadd.f32 %v4273_v7, %v807_v37  ;;  %v1643_v37 = vld [vmem:[%s5073_s4 + $0x30] sm:$0xff] }
 0x11a   : > { %5105 = vst [vmem:[#allocation20_spill] sm:$0xff] %v4312_v34 }
 0x11b   : > { %5106 = vst [vmem:[#allocation21_spill] sm:$0xff] %v4318_v38 }
 0x11d   : > { %v3225_v40 = vpop.f32.mrb[8].mxu0  ;;  %v3233_v41 = vpop.f32.mrb[8].mxu1 }
 0x11e   : > { %v4324_v42 = vadd.f32 %v3225_v40, %v4273_v7  ;;  %v4327_v43 = vadd.f32 %v3233_v41, %v4273_v7  ;;  %v878_v44 = vpop.f32.mrb[9].mxu0  ;;  %v952_v45 = vpop.f32.mrb[9].mxu1  ;;  %v1644_v40 = vld [vmem:[%s5073_s4 + $0x38] sm:$0xff] }
 0x11f   : > { %v4330_v46 = vadd.f32 %v4273_v7, %v878_v44  ;;  %v4333_v47 = vadd.f32 %v4273_v7, %v952_v45  ;;  %v3226_v48 = vpop.f32.mrb[10].mxu0  ;;  %v3234_v49 = vpop.f32.mrb[10].mxu1  ;;  %v4392_v41 = vpack.c.bf16 %v1644_v40, %v1643_v37 }
 0x120   : > { %v4336_v50 = vadd.f32 %v3226_v48, %v4273_v7  ;;  %v4339_v51 = vadd.f32 %v3234_v49, %v4273_v7  ;;  %v881_v52 = vpop.f32.mrb[11].mxu0  ;;  %v955_v53 = vpop.f32.mrb[11].mxu1 }
 0x121   : > { %v4342_v54 = vadd.f32 %v4273_v7, %v881_v52  ;;  %v4345_v55 = vadd.f32 %v4273_v7, %v955_v53  ;;  %5107 = vst [vmem:[#allocation22_spill] sm:$0xff] %v4392_v41  ;;  %3500 = vmatprep.subr.bf16.mxu1 %v4392_v41  ;;  %3532 = vmatprep.subr.bf16.mxu0 %v4392_v41 }
 0x122   : > { %3502 = vmatpush3.bf16.msra.mxu1 %v4392_v41  ;;  %3534 = vmatpush3.bf16.msra.mxu0 %v4392_v41 }
 0x125   : > { %v3241_v56 = vpop.f32.mrb[12].mxu0  ;;  %v3249_v57 = vpop.f32.mrb[12].mxu1 }
 0x126   : > { %v4348_v58 = vadd.f32 %v3241_v56, %v4273_v7  ;;  %v4351_v59 = vadd.f32 %v3249_v57, %v4273_v7  ;;  %v1026_v60 = vpop.f32.mrb[13].mxu0  ;;  %v1100_v61 = vpop.f32.mrb[13].mxu1  ;;  %v1645_v57 = vld [vmem:[%s5073_s4 + $0x40] sm:$0xff] }
 0x127   : > { %v4354_v62 = vadd.f32 %v4273_v7, %v1026_v60  ;;  %v4357_v63 = vadd.f32 %v4273_v7, %v1100_v61  ;;  %v3242_v0 = vpop.f32.mrb[14].mxu0  ;;  %v3250_v2 = vpop.f32.mrb[14].mxu1  ;;  %v1646_v60 = vld [vmem:[%s5073_s4 + $0x48] sm:$0xff] }
 0x128   : > { %v4360_v4 = vadd.f32 %v3242_v0, %v4273_v7  ;;  %1706 = vmax.xlane.f32.xlu1 %v4351_v59  ;;  %v1029_v5 = vpop.f32.mrb[15].mxu0  ;;  %v1103_v8 = vpop.f32.mrb[15].mxu1  ;;  %v4368_v12 = vadd.f32 %v3250_v2, %v4273_v7  ;;  %v4416_v2 = vpack.c.bf16 %v1646_v60, %v1645_v57 }
 0x129   : > { %v4364_v9 = vadd.f32 %v4273_v7, %v1029_v5  ;;  %1702 = vmax.xlane.f32.xlu0 %v4357_v63  ;;  %v4371_v13 = vadd.f32 %v4273_v7, %v1103_v8 }
 0x12a   : > { %5108 = vst [vmem:[#allocation23_spill] sm:$0xff] %v4416_v2  ;;  %3504 = vmatprep.subr.bf16.mxu1 %v4416_v2  ;;  %3536 = vmatprep.subr.bf16.mxu0 %v4416_v2 }
 0x12b   : > { %3506 = vmatpush3.bf16.msra.mxu1 %v4416_v2  ;;  %3538 = vmatpush3.bf16.msra.mxu0 %v4416_v2 }
 0x12c   : > { %1708 = vmax.xlane.f32.xlu1 %v4368_v12 }
 0x12d   : > { %1704 = vmax.xlane.f32.xlu0 %v4371_v13  ;;  %v3257_v16 = vpop.f32.mrb[16].mxu0 }
 0x12e   : > { %v1174_v17 = vpop.f32.mrb[17].mxu0  ;;  %v3265_v20 = vpop.f32.mrb[16].mxu1  ;;  %v4383_v36 = vadd.f32 %v3257_v16, %v4273_v7 }
 0x12f   : > { %v4376_v21 = vadd.f32 %v4273_v7, %v1174_v17  ;;  %v3258_v24 = vpop.f32.mrb[18].mxu0  ;;  %v1248_v25 = vpop.f32.mrb[17].mxu1  ;;  %v4423_v16 = vadd.f32 %v3265_v20, %v4273_v7  ;;  %v1647_v17 = vld [vmem:[%s5073_s4 + $0x50] sm:$0xff] }
 0x130   : > { %v1177_v28 = vpop.f32.mrb[19].mxu0  ;;  %v3266_v29 = vpop.f32.mrb[18].mxu1  ;;  %v4395_v44 = vadd.f32 %v3258_v24, %v4273_v7  ;;  %v4399_v45 = vadd.f32 %v4273_v7, %v1248_v25  ;;  %v1648_v24 = vld [vmem:[%s5073_s4 + $0x58] sm:$0xff] }
 0x131   : > { %v4379_v32 = vadd.f32 %v4273_v7, %v1177_v28  ;;  %1710 = vmax.xlane.f32.xlu0 %v4376_v21  ;;  %v1251_v33 = vpop.f32.mrb[19].mxu1  ;;  %v4433_v25 = vpack.c.bf16 %v1648_v24, %v1647_v17  ;;  %v4437_v28 = vadd.f32 %v3266_v29, %v4273_v7  ;;  %v1649_v29 = vld [vmem:[%s5073_s4 + $0x60] sm:$0xff] }
 0x132   : > { %v4405_v52 = vadd.f32 %v4273_v7, %v1251_v33 }
 0x133   : > { %1712 = vmax.xlane.f32.xlu1 %v4379_v32  ;;  %5109 = vst [vmem:[#allocation24_spill] sm:$0xff] %v4433_v25  ;;  %3508 = vmatprep.subr.bf16.mxu1 %v4433_v25 }
 0x134   : > { %3540 = vmatprep.subr.bf16.mxu0 %v4433_v25  ;;  %3510 = vmatpush3.bf16.msra.mxu1 %v4433_v25 }
 0x135   : > { %1714 = vmax.xlane.f32.xlu0 %v4383_v36  ;;  %v3273_v48 = vpop.f32.mrb[20].mxu0  ;;  %3542 = vmatpush3.bf16.msra.mxu0 %v4433_v25 }
 0x136   : > { %v1322_v49 = vpop.f32.mrb[21].mxu0  ;;  %v4463_v14 = vadd.f32 %v3273_v48, %v4273_v7 }
 0x137   : > { %1716 = vmax.xlane.f32.xlu1 %v4395_v44  ;;  %v3274_v53 = vpop.f32.mrb[22].mxu0  ;;  %v4407_v56 = vpop.f32.mrb[20].mxu1  ;;  %v4441_v20 = vadd.f32 %v4273_v7, %v1322_v49  ;;  %v1650_v49 = vld [vmem:[%s5073_s4 + $0x68] sm:$0xff] }
 0x138   : > { %v1325_v61 = vpop.f32.mrb[23].mxu0  ;;  %v1396_v0 = vpop.f32.mrb[21].mxu1  ;;  %v4456_v10 = vpack.c.bf16 %v1650_v49, %v1649_v29  ;;  %v1651_v29 = vld [vmem:[%s5073_s4 + $0x70] sm:$0xff]  ;;  %v1652_v49 = vld [vmem:[%s5073_s4 + $0x78] sm:$0xff]  ;;  %v4477_v26 = vadd.f32 %v3274_v53, %v4273_v7 }
 0x139   : > { %1718 = vmax.xlane.f32.xlu0 %v4399_v45  ;;  %v3282_v5 = vpop.f32.mrb[22].mxu1  ;;  %v4447_v40 = vadd.f32 %v4273_v7, %v1325_v61  ;;  %v4473_v22 = vpack.c.bf16 %v1652_v49, %v1651_v29  ;;  %v4481_v48 = vadd.f32 %v4273_v7, %v1396_v0  ;;  %v4495_v0 = vadd.f32 %v4407_v56, %v4273_v7 }
 0x13a   : > { %v1399_v8 = vpop.f32.mrb[23].mxu1  ;;  %5110 = vst [vmem:[#allocation25_spill] sm:$0xff] %v4456_v10  ;;  %3512 = vmatprep.subr.bf16.mxu1 %v4456_v10  ;;  %3544 = vmatprep.subr.bf16.mxu0 %v4456_v10  ;;  %v4499_v38 = vadd.f32 %v3282_v5, %v4273_v7 }
 0x13b   : > { %1720 = vmax.xlane.f32.xlu1 %v4405_v52  ;;  %3514 = vmatpush3.bf16.msra.mxu1 %v4456_v10  ;;  %5111 = vst [vmem:[#allocation26_spill] sm:$0xff] %v4473_v22  ;;  %v4487_v29 = vadd.f32 %v4273_v7, %v1399_v8 }
 0x13c   : > { %3546 = vmatpush3.bf16.msra.mxu0 %v4456_v10  ;;  %3516 = vmatprep.subr.bf16.mxu1 %v4473_v22 }
 0x13d   : > { %1722 = vmax.xlane.f32.xlu0 %v4423_v16  ;;  %v3289_v33 = vpop.f32.mrb[24].mxu0  ;;  %3548 = vmatprep.subr.bf16.mxu0 %v4473_v22 }
 0x13e   : > { %v1470_v37 = vpop.f32.mrb[25].mxu0  ;;  %v4511_v56 = vadd.f32 %v3289_v33, %v4273_v7 }
 0x13f   : > { %1724 = vmax.xlane.f32.xlu1 %v4437_v28  ;;  %v3290_v57 = vpop.f32.mrb[26].mxu0  ;;  %v3297_v60 = vpop.f32.mrb[24].mxu1  ;;  %3518 = vmatpush3.bf16.msra.mxu1 %v4473_v22  ;;  %v4503_v8 = vadd.f32 %v4273_v7, %v1470_v37 }
 0x140   : > { %v1473_v17 = vpop.f32.mrb[27].mxu0  ;;  %v1544_v24 = vpop.f32.mrb[25].mxu1  ;;  %3550 = vmatpush3.bf16.msra.mxu0 %v4473_v22  ;;  %v4515_v5 = vadd.f32 %v3290_v57, %v4273_v7  ;;  %v4527_v33 = vadd.f32 %v3297_v60, %v4273_v7 }
 0x141   : > { %1726 = vmax.xlane.f32.xlu0 %v4441_v20  ;;  %v3298_v61 = vpop.f32.mrb[26].mxu1  ;;  %3552 = vmatprep.subr.bf16.mxu0 %v4243_v1  ;;  %v4507_v11 = vadd.f32 %v4273_v7, %v1473_v17  ;;  %v4519_v37 = vadd.f32 %v4273_v7, %v1544_v24 }
 0x142   : > { %v1547_v18 = vpop.f32.mrb[27].mxu1  ;;  %v4531_v57 = vadd.f32 %v3298_v61, %v4273_v7 }
 0x143   : > { %1728 = vmax.xlane.f32.xlu1 %v4447_v40  ;;  %v4523_v17 = vadd.f32 %v4273_v7, %v1547_v18 }
 0x145   : > { %1730 = vmax.xlane.f32.xlu0 %v4463_v14  ;;  %v3305_v34 = vpop.f32.mrb[28].mxu0 }
 0x146   : > { %v1618_v30 = vpop.f32.mrb[29].mxu0  ;;  %v4543_v60 = vadd.f32 %v3305_v34, %v4273_v7 }
 0x147   : > { %1732 = vmax.xlane.f32.xlu1 %v4477_v26  ;;  %v3306_v49 = vpop.f32.mrb[30].mxu0  ;;  %v4535_v24 = vadd.f32 %v4273_v7, %v1618_v30 }
 0x148   : > { %v1621_v53 = vpop.f32.mrb[31].mxu0  ;;  %v4547_v61 = vadd.f32 %v3306_v49, %v4273_v7 }
 0x149   : > { %1734 = vmax.xlane.f32.xlu0 %v4481_v48  ;;  %v4539_v18 = vadd.f32 %v4273_v7, %v1621_v53 }
 0x14b   : > { %1736 = vmax.xlane.f32.xlu1 %v4487_v29 }
 0x14d   : > { %1738 = vmax.xlane.f32.xlu0 %v4495_v0 }
 0x14f   : > { %1740 = vmax.xlane.f32.xlu1 %v4499_v38 }
 0x151   : > { %1742 = vmax.xlane.f32.xlu0 %v4503_v8 }
 0x153   : > { %1744 = vmax.xlane.f32.xlu1 %v4507_v11 }
 0x155   : > { %1746 = vmax.xlane.f32.xlu0 %v4511_v56 }
 0x157   : > { %1748 = vmax.xlane.f32.xlu1 %v4515_v5 }
 0x159   : > { %1750 = vmax.xlane.f32.xlu0 %v4519_v37 }
 0x15b   : > { %1752 = vmax.xlane.f32.xlu1 %v4523_v17 }
 0x15d   : > { %1754 = vmax.xlane.f32.xlu0 %v4527_v33 }
 0x15f   : > { %1756 = vmax.xlane.f32.xlu1 %v4531_v57 }
 0x161   : > { %1758 = vmax.xlane.f32.xlu0 %v4535_v24 }
 0x163   : > { %1760 = vmax.xlane.f32.xlu1 %v4539_v18 }
 0x165   : > { %1762 = vmax.xlane.f32.xlu0 %v4543_v60 }
 0x167   : > { %1764 = vmax.xlane.f32.xlu1 %v4547_v61 }
 0x1b5   : > { %v4551_v30 = vpop.xlane.xlu1 %1706 }
 0x1b6   : > { %v4553_v19 = vpop.xlane.xlu0 %1702  ;;  %v1768_v34 = vsub.f32 %v4351_v59, %v4551_v30 }
 0x1b7   : > { %v1766_v53 = vsub.f32 %v4357_v63, %v4553_v19 }
 0x1b8   : > { %v1802_v10 = vmul.f32 1.442695, %v1768_v34 }
 0x1b9   : > { %v1798_v15 = vmul.f32 1.442695, %v1766_v53  ;;  %v4559_v23 = vpop.xlane.xlu1 %1708 }
 0x1ba   : > { %v1769_v7 = vsub.f32 %v4368_v12, %v4559_v23  ;;  %v4563_v49 = vpop.xlane.xlu0 %1704 }
 0x1bb   : > { %3658 = vpow2.f32 %v1798_v15  ;;  %v1767_v22 = vsub.f32 %v4371_v13, %v4563_v49 }
 0x1bc   : > { %v1804_v2 = vmul.f32 1.442695, %v1769_v7 }
 0x1bd   : > { %v1800_v25 = vmul.f32 1.442695, %v1767_v22 }
 0x1be   : > { %v4567_v41 = vpop.xlane.xlu0 %1710 }
 0x1bf   : > { %3660 = vpow2.f32 %v1800_v25  ;;  %v1770_v59 = vsub.f32 %v4376_v21, %v4567_v41 }
 0x1c0   : > { %3662 = vpow2.f32 %v1802_v10  ;;  %v4571_v63 = vpop.xlane.xlu1 %1712 }
 0x1c1   : > { %v1806_v53 = vmul.f32 1.442695, %v1770_v59  ;;  %v1771_v12 = vsub.f32 %v4379_v32, %v4571_v63  ;;  %3664 = vpow2.f32 %v1804_v2 }
 0x1c2   : > { %v4575_v15 = vpop.xlane.xlu0 %1714 }
 0x1c3   : > { %3666 = vpow2.f32 %v1806_v53  ;;  %v1808_v13 = vmul.f32 1.442695, %v1771_v12  ;;  %v1772_v22 = vsub.f32 %v4383_v36, %v4575_v15 }
 0x1c4   : > { %v4579_v34 = vpop.xlane.xlu1 %1716 }
 0x1c5   : > { %v3659_v25 = vpop.eup %3658  ;;  %v1810_v7 = vmul.f32 1.442695, %v1772_v22  ;;  %v1773_v10 = vsub.f32 %v4395_v44, %v4579_v34  ;;  %3668 = vpow2.f32 %v1808_v13 }
 0x1c6   : > { %3339 = vmatprep.mubr.f32.mxu1 %v3659_v25  ;;  %v4583_v21 = vpop.xlane.xlu0 %1718 }
 0x1c7   : > { %3670 = vpow2.f32 %v1810_v7  ;;  %v1812_v32 = vmul.f32 1.442695, %v1773_v10  ;;  %v1774_v2 = vsub.f32 %v4399_v45, %v4583_v21 }
 0x1c8   : > { %v4587_v59 = vpop.xlane.xlu1 %1720 }
 0x1c9   : > { %v3661_v53 = vpop.eup %3660  ;;  %v1814_v36 = vmul.f32 1.442695, %v1774_v2  ;;  %v1775_v12 = vsub.f32 %v4405_v52, %v4587_v59  ;;  %3672 = vpow2.f32 %v1812_v32 }
 0x1ca   : > { %v3663_v22 = vpop.eup %3662  ;;  %3340 = vmatmul.mubr.f32.vlgmr.msra.gmra.mrb[28].mxu1 %v3661_v53  ;;  %v4591_v44 = vpop.xlane.xlu0 %1722 }
 0x1cb   : > { %3674 = vpow2.f32 %v1814_v36  ;;  %v1816_v13 = vmul.f32 1.442695, %v1775_v12  ;;  %v1776_v25 = vsub.f32 %v4423_v16, %v4591_v44  ;;  %3342 = vmatprep.mubr.f32.mxu1 %v3663_v22  ;;  %v3665_v7 = vpop.eup %3664 }
 0x1cc   : > { %v4595_v45 = vpop.xlane.xlu1 %1724 }
 0x1cd   : > { %v3667_v10 = vpop.eup %3666  ;;  %v1818_v6 = vmul.f32 1.442695, %v1776_v25  ;;  %v1777_v2 = vsub.f32 %v4437_v28, %v4595_v45  ;;  %3676 = vpow2.f32 %v1816_v13 }
 0x1ce   : > { %3343 = vmatmul.mubr.f32.gmra.mrb[30].mxu1 %v3665_v7  ;;  %v4599_v52 = vpop.xlane.xlu0 %1726 }
 0x1cf   : > { %3678 = vpow2.f32 %v1818_v6  ;;  %v1820_v32 = vmul.f32 1.442695, %v1777_v2  ;;  %v1778_v53 = vsub.f32 %v4441_v20, %v4599_v52  ;;  %3345 = vmatprep.mubr.f32.mxu1 %v3667_v10  ;;  %v3669_v16 = vpop.eup %3668 }
 0x1d0   : > { %v4603_v36 = vpop.xlane.xlu1 %1728 }
 0x1d1   : > { %v3671_v12 = vpop.eup %3670  ;;  %v1822_v22 = vmul.f32 1.442695, %v1778_v53  ;;  %v1779_v25 = vsub.f32 %v4447_v40, %v4603_v36  ;;  %3680 = vpow2.f32 %v1820_v32 }
 0x1d2   : > { %3346 = vmatmul.mubr.f32.gmra.mrb[32].mxu1 %v3669_v16  ;;  %v4607_v28 = vpop.xlane.xlu0 %1730 }
 0x1d3   : > { %3682 = vpow2.f32 %v1822_v22  ;;  %v1824_v13 = vmul.f32 1.442695, %v1779_v25  ;;  %v1780_v6 = vsub.f32 %v4463_v14, %v4607_v28  ;;  %3348 = vmatprep.mubr.f32.mxu1 %v3671_v12  ;;  %v3673_v20 = vpop.eup %3672 }
 0x1d4   : > { %v4611_v7 = vpop.xlane.xlu1 %1732 }
 0x1d5   : > { %v3675_v10 = vpop.eup %3674  ;;  %v1826_v2 = vmul.f32 1.442695, %v1780_v6  ;;  %v1781_v53 = vsub.f32 %v4477_v26, %v4611_v7  ;;  %3684 = vpow2.f32 %v1824_v13 }
 0x1d6   : > { %3349 = vmatmul.mubr.f32.gmra.mrb[34].mxu1 %v3673_v20  ;;  %v4615_v40 = vpop.xlane.xlu0 %1734 }
 0x1d7   : > { %3686 = vpow2.f32 %v1826_v2  ;;  %v1828_v32 = vmul.f32 1.442695, %v1781_v53  ;;  %v1782_v16 = vsub.f32 %v4481_v48, %v4615_v40  ;;  %3351 = vmatprep.mubr.f32.mxu1 %v3675_v10  ;;  %v3677_v14 = vpop.eup %3676 }
 0x1d8   : > { %v4619_v12 = vpop.xlane.xlu1 %1736 }
 0x1d9   : > { %v3679_v22 = vpop.eup %3678  ;;  %v1830_v25 = vmul.f32 1.442695, %v1782_v16  ;;  %v1783_v6 = vsub.f32 %v4487_v29, %v4619_v12  ;;  %3688 = vpow2.f32 %v1828_v32 }
 0x1da   : > { %3352 = vmatmul.mubr.f32.gmra.mrb[36].mxu1 %v3677_v14  ;;  %v4623_v26 = vpop.xlane.xlu0 %1738 }
 0x1db   : > { %3690 = vpow2.f32 %v1830_v25  ;;  %v1832_v13 = vmul.f32 1.442695, %v1783_v6  ;;  %v1784_v20 = vsub.f32 %v4495_v0, %v4623_v26  ;;  %3354 = vmatprep.mubr.f32.mxu1 %v3679_v22  ;;  %v3681_v48 = vpop.eup %3680 }
 0x1dc   : > { %v4627_v10 = vpop.xlane.xlu1 %1740 }
 0x1dd   : > { %v3683_v2 = vpop.eup %3682  ;;  %v1834_v53 = vmul.f32 1.442695, %v1784_v20  ;;  %v1785_v16 = vsub.f32 %v4499_v38, %v4627_v10  ;;  %3692 = vpow2.f32 %v1832_v13 }
 0x1de   : > { %3355 = vmatmul.mubr.f32.gmra.mrb[38].mxu1 %v3681_v48  ;;  %v4631_v29 = vpop.xlane.xlu0 %1742 }
 0x1df   : > { %3694 = vpow2.f32 %v1834_v53  ;;  %v1836_v32 = vmul.f32 1.442695, %v1785_v16  ;;  %v1786_v14 = vsub.f32 %v4503_v8, %v4631_v29  ;;  %3357 = vmatprep.mubr.f32.mxu1 %v3683_v2  ;;  %v3685_v0 = vpop.eup %3684 }
 0x1e0   : > { %v4635_v22 = vpop.xlane.xlu1 %1744 }
 0x1e1   : > { %v3687_v25 = vpop.eup %3686  ;;  %v1838_v6 = vmul.f32 1.442695, %v1786_v14  ;;  %v1787_v20 = vsub.f32 %v4507_v11, %v4635_v22  ;;  %3696 = vpow2.f32 %v1836_v32 }
 0x1e2   : > { %3358 = vmatmul.mubr.f32.gmra.mrb[40].mxu1 %v3685_v0  ;;  %v4639_v38 = vpop.xlane.xlu0 %1746 }
 0x1e3   : > { %3698 = vpow2.f32 %v1838_v6  ;;  %v1840_v13 = vmul.f32 1.442695, %v1787_v20  ;;  %v1788_v48 = vsub.f32 %v4511_v56, %v4639_v38  ;;  %3360 = vmatprep.mubr.f32.mxu1 %v3687_v25  ;;  %v3689_v8 = vpop.eup %3688 }
 0x1e4   : > { %v4643_v2 = vpop.xlane.xlu1 %1748 }
 0x1e5   : > { %v3691_v53 = vpop.eup %3690  ;;  %v1842_v16 = vmul.f32 1.442695, %v1788_v48  ;;  %v1789_v14 = vsub.f32 %v4515_v5, %v4643_v2  ;;  %3700 = vpow2.f32 %v1840_v13 }
 0x1e6   : > { %3361 = vmatmul.mubr.f32.gmra.mrb[42].mxu1 %v3689_v8  ;;  %v4647_v11 = vpop.xlane.xlu0 %1750 }
 0x1e7   : > { %3702 = vpow2.f32 %v1842_v16  ;;  %v1844_v32 = vmul.f32 1.442695, %v1789_v14  ;;  %v1790_v0 = vsub.f32 %v4519_v37, %v4647_v11  ;;  %3363 = vmatprep.mubr.f32.mxu1 %v3691_v53  ;;  %v3693_v56 = vpop.eup %3692 }
 0x1e8   : > { %v4651_v25 = vpop.xlane.xlu1 %1752 }
 0x1e9   : > { %v3695_v6 = vpop.eup %3694  ;;  %v1846_v20 = vmul.f32 1.442695, %v1790_v0  ;;  %v1791_v48 = vsub.f32 %v4523_v17, %v4651_v25  ;;  %3704 = vpow2.f32 %v1844_v32 }
 0x1ea   : > { %3364 = vmatmul.mubr.f32.gmra.mrb[44].mxu1 %v3693_v56  ;;  %v4655_v5 = vpop.xlane.xlu0 %1754 }
 0x1eb   : > { %3706 = vpow2.f32 %v1846_v20  ;;  %v1848_v13 = vmul.f32 1.442695, %v1791_v48  ;;  %v1792_v8 = vsub.f32 %v4527_v33, %v4655_v5  ;;  %3366 = vmatprep.mubr.f32.mxu1 %v3695_v6  ;;  %v3697_v37 = vpop.eup %3696 }
 0x1ec   : > { %v4659_v53 = vpop.xlane.xlu1 %1756 }
 0x1ed   : > { %v3699_v16 = vpop.eup %3698  ;;  %v1850_v14 = vmul.f32 1.442695, %v1792_v8  ;;  %v1793_v0 = vsub.f32 %v4531_v57, %v4659_v53  ;;  %3708 = vpow2.f32 %v1848_v13 }
 0x1ee   : > { %3367 = vmatmul.mubr.f32.gmra.mrb[46].mxu1 %v3697_v37  ;;  %v4663_v17 = vpop.xlane.xlu0 %1758 }
 0x1ef   : > { %3710 = vpow2.f32 %v1850_v14  ;;  %v1852_v32 = vmul.f32 1.442695, %v1793_v0  ;;  %v1794_v56 = vsub.f32 %v4535_v24, %v4663_v17  ;;  %3369 = vmatprep.mubr.f32.mxu1 %v3699_v16  ;;  %v3701_v33 = vpop.eup %3700 }
 0x1f0   : > { %v4667_v6 = vpop.xlane.xlu1 %1760 }
 0x1f1   : > { %v3703_v20 = vpop.eup %3702  ;;  %v1854_v48 = vmul.f32 1.442695, %v1794_v56  ;;  %v1795_v8 = vsub.f32 %v4539_v18, %v4667_v6  ;;  %3712 = vpow2.f32 %v1852_v32 }
 0x1f2   : > { %3370 = vmatmul.mubr.f32.gmra.mrb[48].mxu1 %v3701_v33  ;;  %v4671_v57 = vpop.xlane.xlu0 %1762 }
 0x1f3   : > { %3714 = vpow2.f32 %v1854_v48  ;;  %v1856_v13 = vmul.f32 1.442695, %v1795_v8  ;;  %v1796_v37 = vsub.f32 %v4543_v60, %v4671_v57  ;;  %3372 = vmatprep.mubr.f32.mxu1 %v3703_v20  ;;  %v3705_v24 = vpop.eup %3704 }
 0x1f4   : > { %v4675_v16 = vpop.xlane.xlu1 %1764 }
 0x1f5   : > { %v3707_v14 = vpop.eup %3706  ;;  %v1858_v0 = vmul.f32 1.442695, %v1796_v37  ;;  %v1797_v56 = vsub.f32 %v4547_v61, %v4675_v16  ;;  %3716 = vpow2.f32 %v1856_v13 }
 0x1f6   : > { %3373 = vmatmul.mubr.f32.gmra.mrb[50].mxu1 %v3705_v24 }
 0x1f7   : > { %3718 = vpow2.f32 %v1858_v0  ;;  %v1860_v18 = vmul.f32 1.442695, %v1797_v56  ;;  %3375 = vmatprep.mubr.f32.mxu1 %v3707_v14  ;;  %v3709_v32 = vpop.eup %3708 }
 0x1f9   : > { %v3711_v33 = vpop.eup %3710  ;;  %3720 = vpow2.f32 %v1860_v18 }
 0x1fa   : > { %3376 = vmatmul.mubr.f32.gmra.mrb[52].mxu1 %v3709_v32 }
 0x1fb   : > { %3378 = vmatprep.mubr.f32.mxu1 %v3711_v33  ;;  %v3713_v60 = vpop.eup %3712 }
 0x1fd   : > { %v3715_v20 = vpop.eup %3714 }
 0x1fe   : > { %3379 = vmatmul.mubr.f32.gmra.mrb[54].mxu1 %v3713_v60 }
 0x1ff   : > { %3381 = vmatprep.mubr.f32.mxu1 %v3715_v20  ;;  %v3717_v48 = vpop.eup %3716 }
 0x201   : > { %v3719_v8 = vpop.eup %3718 }
 0x202   : > { %3382 = vmatmul.mubr.f32.gmra.mrb[56].mxu1 %v3717_v48 }
 0x203   : > { %3384 = vmatprep.mubr.f32.mxu1 %v3719_v8  ;;  %v3721_v37 = vpop.eup %3720  ;;  %v4682_v8 = vld [vmem:[%s5072_s3] ss:$0 sm:$0xff] }
 0x206   : > { %3385 = vmatmul.mubr.f32.gmra.mrb[58].mxu1 %v3721_v37 }
 0x29d   : > { %v3341_v61 = vpop.f32.mrb[28].mxu1 }
 0x29e   : > { %3722 = vlog2.f32 %v3341_v61  ;;  %v1928_v13 = vpop.f32.mrb[29].mxu1 }
 0x29f   : > { %3724 = vlog2.f32 %v1928_v13 }
 0x2a1   : > { %v3344_v24 = vpop.f32.mrb[30].mxu1 }
 0x2a2   : > { %3726 = vlog2.f32 %v3344_v24  ;;  %v1938_v14 = vpop.f32.mrb[31].mxu1 }
 0x2a3   : > { %3728 = vlog2.f32 %v1938_v14 }
 0x2a5   : > { %v3347_v0 = vpop.f32.mrb[32].mxu1 }
 0x2a6   : > { %3730 = vlog2.f32 %v3347_v0  ;;  %v1948_v56 = vpop.f32.mrb[33].mxu1 }
 0x2a7   : > { %3732 = vlog2.f32 %v1948_v56 }
 0x2a8   : > { %v3723_v18 = vpop.eup %3722 }
 0x2a9   : > { %v3725_v32 = vpop.eup %3724  ;;  %v2090_v33 = vmul.f32 0.6931472, %v3723_v18  ;;  %v3350_v60 = vpop.f32.mrb[34].mxu1 }
 0x2aa   : > { %v2088_v20 = vmul.f32 0.6931472, %v3725_v32  ;;  %3734 = vlog2.f32 %v3350_v60  ;;  %v1958_v48 = vpop.f32.mrb[35].mxu1 }
 0x2ab   : > { %v2152_v37 = vadd.f32 %v2090_v33, %v4563_v49  ;;  %3736 = vlog2.f32 %v1958_v48 }
 0x2ac   : > { %v3727_v61 = vpop.eup %3726  ;;  %v2151_v13 = vadd.f32 %v2088_v20, %v4553_v19 }
 0x2ad   : > { %v3729_v24 = vpop.eup %3728  ;;  %v2094_v14 = vmul.f32 0.6931472, %v3727_v61  ;;  %v3353_v0 = vpop.f32.mrb[36].mxu1  ;;  %v2190_v56 = vadd.f32 %v4682_v8, %v2152_v37 }
 0x2ae   : > { %v2092_v18 = vmul.f32 0.6931472, %v3729_v24  ;;  %3738 = vlog2.f32 %v3353_v0  ;;  %v1968_v32 = vpop.f32.mrb[37].mxu1  ;;  %v2189_v60 = vadd.f32 %v4682_v8, %v2151_v13 }
 0x2af   : > { %v2154_v3 = vadd.f32 %v2094_v14, %v4559_v23  ;;  %3740 = vlog2.f32 %v1968_v32  ;;  %v4690_v1 = vadd.f32 %v2190_v56, %v4321_v39 }
 0x2b0   : > { %v3731_v49 = vpop.eup %3730  ;;  %v2153_v33 = vadd.f32 %v2092_v18, %v4551_v30  ;;  %v4694_v19 = vadd.f32 %v2189_v60, %v4309_v31 }
 0x2b1   : > { %v3733_v20 = vpop.eup %3732  ;;  %v2098_v48 = vmul.f32 0.6931472, %v3731_v49  ;;  %v3356_v37 = vpop.f32.mrb[38].mxu1  ;;  %v2192_v61 = vadd.f32 %v4682_v8, %v2154_v3 }
 0x2b2   : > { %v2096_v24 = vmul.f32 0.6931472, %v3733_v20  ;;  %3742 = vlog2.f32 %v3356_v37  ;;  %v1978_v13 = vpop.f32.mrb[39].mxu1  ;;  %v2191_v23 = vadd.f32 %v4682_v8, %v2153_v33 }
 0x2b3   : > { %v2156_v14 = vadd.f32 %v2098_v48, %v4571_v63  ;;  %3744 = vlog2.f32 %v1978_v13  ;;  %v4700_v39 = vadd.f32 %v2192_v61, %v4315_v35 }
 0x2b4   : > { %v3735_v30 = vpop.eup %3734  ;;  %v2155_v31 = vadd.f32 %v2096_v24, %v4567_v41  ;;  %v4704_v0 = vadd.f32 %v2191_v23, %v4303_v27 }
 0x2b5   : > { %v3737_v56 = vpop.eup %3736  ;;  %v2102_v18 = vmul.f32 0.6931472, %v3735_v30  ;;  %v3359_v3 = vpop.f32.mrb[40].mxu1  ;;  %v2194_v32 = vadd.f32 %v4682_v8, %v2156_v14 }
 0x2b6   : > { %v2100_v60 = vmul.f32 0.6931472, %v3737_v56  ;;  %3746 = vlog2.f32 %v3359_v3  ;;  %v1988_v49 = vpop.f32.mrb[41].mxu1  ;;  %v2193_v63 = vadd.f32 %v4682_v8, %v2155_v31 }
 0x2b7   : > { %v2158_v33 = vadd.f32 %v2102_v18, %v4579_v34  ;;  %3748 = vlog2.f32 %v1988_v49  ;;  %v4710_v35 = vadd.f32 %v2194_v32, %v4342_v54 }
 0x2b8   : > { %v3739_v41 = vpop.eup %3738  ;;  %v2157_v27 = vadd.f32 %v2100_v60, %v4575_v15  ;;  %v4714_v20 = vadd.f32 %v2193_v63, %v4330_v46 }
 0x2b9   : > { %v3741_v48 = vpop.eup %3740  ;;  %v2106_v37 = vmul.f32 0.6931472, %v3739_v41  ;;  %v3362_v61 = vpop.f32.mrb[42].mxu1  ;;  %v2196_v24 = vadd.f32 %v4682_v8, %v2158_v33 }
 0x2ba   : > { %v2104_v13 = vmul.f32 0.6931472, %v3741_v48  ;;  %3750 = vlog2.f32 %v3362_v61  ;;  %v1998_v23 = vpop.f32.mrb[43].mxu1  ;;  %v2195_v34 = vadd.f32 %v4682_v8, %v2157_v27 }
 0x2bb   : > { %v2160_v14 = vadd.f32 %v2106_v37, %v4587_v59  ;;  %3752 = vlog2.f32 %v1998_v23  ;;  %v4720_v54 = vadd.f32 %v2196_v24, %v4336_v50 }
 0x2bc   : > { %v3743_v15 = vpop.eup %3742  ;;  %v2159_v46 = vadd.f32 %v2104_v13, %v4583_v21  ;;  %v4724_v30 = vadd.f32 %v2195_v34, %v4324_v42 }
 0x2bd   : > { %v3745_v31 = vpop.eup %3744  ;;  %v2110_v56 = vmul.f32 0.6931472, %v3743_v15  ;;  %v3365_v18 = vpop.f32.mrb[44].mxu1  ;;  %v2198_v3 = vadd.f32 %v4682_v8, %v2160_v14 }
 0x2be   : > { %v2108_v32 = vmul.f32 0.6931472, %v3745_v31  ;;  %3754 = vlog2.f32 %v3365_v18  ;;  %v2008_v60 = vpop.f32.mrb[45].mxu1  ;;  %v2197_v59 = vadd.f32 %v4682_v8, %v2159_v46 }
 0x2bf   : > { %v2162_v49 = vadd.f32 %v2110_v56, %v4595_v45  ;;  %3756 = vlog2.f32 %v2008_v60  ;;  %v4730_v50 = vadd.f32 %v2198_v3, %v4345_v55 }
 0x2c0   : > { %v3747_v21 = vpop.eup %3746  ;;  %v2161_v42 = vadd.f32 %v2108_v32, %v4591_v44  ;;  %v4734_v63 = vadd.f32 %v2197_v59, %v4333_v47 }
 0x2c1   : > { %v3749_v33 = vpop.eup %3748  ;;  %v2114_v41 = vmul.f32 0.6931472, %v3747_v21  ;;  %v3368_v27 = vpop.f32.mrb[46].mxu1  ;;  %v2200_v48 = vadd.f32 %v4682_v8, %v2162_v49 }
 0x2c2   : > { %v2112_v37 = vmul.f32 0.6931472, %v3749_v33  ;;  %3758 = vlog2.f32 %v3368_v27  ;;  %v2018_v61 = vpop.f32.mrb[47].mxu1  ;;  %v2199_v45 = vadd.f32 %v4682_v8, %v2161_v42 }
 0x2c3   : > { %v2164_v24 = vadd.f32 %v2114_v41, %v4603_v36  ;;  %3760 = vlog2.f32 %v2018_v61  ;;  %v4740_v55 = vadd.f32 %v2200_v48, %v4339_v51 }
 0x2c4   : > { %v3751_v44 = vpop.eup %3750  ;;  %v2163_v47 = vadd.f32 %v2112_v37, %v4599_v52  ;;  %v4744_v13 = vadd.f32 %v2199_v45, %v4327_v43 }
 0x2c5   : > { %v3753_v23 = vpop.eup %3752  ;;  %v2118_v34 = vmul.f32 0.6931472, %v3751_v44  ;;  %v3371_v14 = vpop.f32.mrb[48].mxu1  ;;  %v2202_v15 = vadd.f32 %v4682_v8, %v2164_v24 }
 0x2c6   : > { %v2116_v46 = vmul.f32 0.6931472, %v3753_v23  ;;  %3762 = vlog2.f32 %v3371_v14  ;;  %v2028_v31 = vpop.f32.mrb[49].mxu1  ;;  %v2201_v36 = vadd.f32 %v4682_v8, %v2163_v47 }
 0x2c7   : > { %v2166_v56 = vadd.f32 %v2118_v34, %v4611_v7  ;;  %3764 = vlog2.f32 %v2028_v31  ;;  %v4750_v51 = vadd.f32 %v2202_v15, %v4364_v9 }
 0x2c8   : > { %v3755_v52 = vpop.eup %3754  ;;  %v2165_v43 = vadd.f32 %v2116_v46, %v4607_v28  ;;  %v4754_v18 = vadd.f32 %v2201_v36, %v4354_v62 }
 0x2c9   : > { %v3757_v3 = vpop.eup %3756  ;;  %v2122_v32 = vmul.f32 0.6931472, %v3755_v52  ;;  %v3374_v60 = vpop.f32.mrb[50].mxu1  ;;  %v2204_v59 = vadd.f32 %v4682_v8, %v2166_v56 }
 0x2ca   : > { %v2120_v49 = vmul.f32 0.6931472, %v3757_v3  ;;  %3766 = vlog2.f32 %v3374_v60  ;;  %v2038_v21 = vpop.f32.mrb[51].mxu1  ;;  %v2203_v7 = vadd.f32 %v4682_v8, %v2165_v43 }
 0x2cb   : > { %v2168_v42 = vadd.f32 %v2122_v32, %v4619_v12  ;;  %3768 = vlog2.f32 %v2038_v21  ;;  %v4760_v9 = vadd.f32 %v2204_v59, %v4360_v4 }
 0x2cc   : > { %v3759_v28 = vpop.eup %3758  ;;  %v2167_v62 = vadd.f32 %v2120_v49, %v4615_v40  ;;  %v4764_v33 = vadd.f32 %v2203_v7, %v4348_v58 }
 0x2cd   : > { %v3761_v41 = vpop.eup %3760  ;;  %v2126_v27 = vmul.f32 0.6931472, %v3759_v28  ;;  %v3377_v48 = vpop.f32.mrb[52].mxu1  ;;  %v2206_v37 = vadd.f32 %v4682_v8, %v2168_v42 }
 0x2ce   : > { %v2124_v61 = vmul.f32 0.6931472, %v3761_v41  ;;  %3770 = vlog2.f32 %v3377_v48  ;;  %v2048_v45 = vpop.f32.mrb[53].mxu1  ;;  %v2205_v12 = vadd.f32 %v4682_v8, %v2167_v62 }
 0x2cf   : > { %v2170_v24 = vadd.f32 %v2126_v27, %v4627_v10  ;;  %3772 = vlog2.f32 %v2048_v45  ;;  %v4770_v4 = vadd.f32 %v4690_v1, %v2206_v37 }
 0x2d0   : > { %v3763_v40 = vpop.eup %3762  ;;  %v2169_v58 = vadd.f32 %v2124_v61, %v4623_v26  ;;  %v4774_v44 = vadd.f32 %v4694_v19, %v2205_v12 }
 0x2d1   : > { %v3765_v47 = vpop.eup %3764  ;;  %v2130_v23 = vmul.f32 0.6931472, %v3763_v40  ;;  %2295 = vmax.xlane.f32.xlu1 %v4770_v4  ;;  %v3380_v34 = vpop.f32.mrb[54].mxu1  ;;  %v2208_v14 = vadd.f32 %v4682_v8, %v2170_v24 }
 0x2d2   : > { %v2128_v15 = vmul.f32 0.6931472, %v3765_v47  ;;  %3774 = vlog2.f32 %v3380_v34  ;;  %2293 = vmax.xlane.f32.xlu0 %v4774_v44  ;;  %v2058_v10 = vpop.f32.mrb[55].mxu1  ;;  %v2207_v1 = vadd.f32 %v4682_v8, %v2169_v58 }
 0x2d3   : > { %v2172_v46 = vadd.f32 %v2130_v23, %v4635_v22  ;;  %3776 = vlog2.f32 %v2058_v10  ;;  %v4782_v26 = vadd.f32 %v4700_v39, %v2208_v14 }
 0x2d4   : > { %v3767_v19 = vpop.eup %3766  ;;  %v2171_v31 = vadd.f32 %v2128_v15, %v4631_v29  ;;  %v4786_v36 = vadd.f32 %v4704_v0, %v2207_v1 }
 0x2d5   : > { %v3769_v56 = vpop.eup %3768  ;;  %v2134_v52 = vmul.f32 0.6931472, %v3767_v19  ;;  %2299 = vmax.xlane.f32.xlu1 %v4782_v26  ;;  %v3383_v43 = vpop.f32.mrb[56].mxu1  ;;  %v2210_v3 = vadd.f32 %v4682_v8, %v2172_v46 }
 0x2d6   : > { %v2132_v32 = vmul.f32 0.6931472, %v3769_v56  ;;  %3778 = vlog2.f32 %v3383_v43  ;;  %2297 = vmax.xlane.f32.xlu0 %v4786_v36  ;;  %v2068_v22 = vpop.f32.mrb[57].mxu1  ;;  %v2209_v39 = vadd.f32 %v4682_v8, %v2171_v31 }
 0x2d7   : > { %v2174_v60 = vadd.f32 %v2134_v52, %v4643_v2  ;;  %3780 = vlog2.f32 %v2068_v22  ;;  %v4794_v29 = vadd.f32 %v4710_v35, %v2210_v3 }
 0x2d8   : > { %v3771_v0 = vpop.eup %3770  ;;  %v2173_v59 = vadd.f32 %v2132_v32, %v4639_v38  ;;  %v4798_v49 = vadd.f32 %v4714_v20, %v2209_v39 }
 0x2d9   : > { %v3773_v21 = vpop.eup %3772  ;;  %v2138_v7 = vmul.f32 0.6931472, %v3771_v0  ;;  %v3386_v42 = vpop.f32.mrb[58].mxu1  ;;  %2303 = vmax.xlane.f32.xlu1 %v4794_v29  ;;  %v2212_v28 = vadd.f32 %v4682_v8, %v2174_v60 }
 0x2da   : > { %v2136_v62 = vmul.f32 0.6931472, %v3773_v21  ;;  %3782 = vlog2.f32 %v3386_v42  ;;  %v2078_v2 = vpop.f32.mrb[59].mxu1  ;;  %2301 = vmax.xlane.f32.xlu0 %v4798_v49  ;;  %v2211_v35 = vadd.f32 %v4682_v8, %v2173_v59 }
 0x2db   : > { %v2176_v41 = vadd.f32 %v2138_v7, %v4651_v25  ;;  %3784 = vlog2.f32 %v2078_v2  ;;  %v4806_v38 = vadd.f32 %v4720_v54, %v2212_v28 }
 0x2dc   : > { %v3775_v20 = vpop.eup %3774  ;;  %v2175_v27 = vadd.f32 %v2136_v62, %v4647_v11  ;;  %v4810_v48 = vadd.f32 %v4724_v30, %v2211_v35 }
 0x2dd   : > { %v3777_v37 = vpop.eup %3776  ;;  %v2142_v61 = vmul.f32 0.6931472, %v3775_v20  ;;  %2307 = vmax.xlane.f32.xlu1 %v4806_v38  ;;  %v2214_v45 = vadd.f32 %v4682_v8, %v2176_v41 }
 0x2de   : > { %v2140_v12 = vmul.f32 0.6931472, %v3777_v37  ;;  %2305 = vmax.xlane.f32.xlu0 %v4810_v48  ;;  %v2213_v25 = vadd.f32 %v4682_v8, %v2175_v27 }
 0x2df   : > { %v2178_v54 = vadd.f32 %v2142_v61, %v4659_v53  ;;  %v4818_v24 = vadd.f32 %v4730_v50, %v2214_v45  ;;  %v5112_v61 = vld [vmem:[#allocation7_spill] sm:$0xff] }
 0x2e0   : > { %v3779_v11 = vpop.eup %3778  ;;  %v2177_v30 = vadd.f32 %v2140_v12, %v4655_v5  ;;  %v4822_v40 = vadd.f32 %v4734_v63, %v2213_v25 }
 0x2e1   : > { %v3781_v58 = vpop.eup %3780  ;;  %v2146_v47 = vmul.f32 0.6931472, %v3779_v11  ;;  %2311 = vmax.xlane.f32.xlu1 %v4818_v24  ;;  %v2216_v23 = vadd.f32 %v4682_v8, %v2178_v54  ;;  %v5113_v54 = vld [vmem:[#allocation8_spill] sm:$0xff] }
 0x2e2   : > { %v2144_v34 = vmul.f32 0.6931472, %v3781_v58  ;;  %2309 = vmax.xlane.f32.xlu0 %v4822_v40  ;;  %v2215_v53 = vadd.f32 %v4682_v8, %v2177_v30 }
 0x2e3   : > { %v2180_v50 = vadd.f32 %v2146_v47, %v4667_v6  ;;  %v4830_v14 = vadd.f32 %v4740_v55, %v2216_v23 }
 0x2e4   : > { %v3783_v5 = vpop.eup %3782  ;;  %v2179_v63 = vadd.f32 %v2144_v34, %v4663_v17  ;;  %v4834_v15 = vadd.f32 %v4744_v13, %v2215_v53  ;;  %v5114_v53 = vld [vmem:[#allocation9_spill] sm:$0xff] }
 0x2e5   : > { %v3785_v10 = vpop.eup %3784  ;;  %v2150_v1 = vmul.f32 0.6931472, %v3783_v5  ;;  %2315 = vmax.xlane.f32.xlu1 %v4830_v14  ;;  %v2218_v46 = vadd.f32 %v4682_v8, %v2180_v50 }
 0x2e6   : > { %v2148_v19 = vmul.f32 0.6931472, %v3785_v10  ;;  %2313 = vmax.xlane.f32.xlu0 %v4834_v15  ;;  %v2217_v6 = vadd.f32 %v4682_v8, %v2179_v63 }
 0x2e7   : > { %v2182_v55 = vadd.f32 %v2150_v1, %v4675_v16  ;;  %v4842_v31 = vadd.f32 %v4750_v51, %v2218_v46 }
 0x2e8   : > { %v2181_v17 = vadd.f32 %v2148_v19, %v4671_v57  ;;  %v4846_v13 = vadd.f32 %v4754_v18, %v2217_v6  ;;  %v5115_v19 = vld [vmem:[#allocation22_spill] sm:$0xff] }
 0x2e9   : > { %2319 = vmax.xlane.f32.xlu1 %v4842_v31  ;;  %v2220_v56 = vadd.f32 %v4682_v8, %v2182_v55 }
 0x2ea   : > { %2317 = vmax.xlane.f32.xlu0 %v4846_v13  ;;  %v2219_v52 = vadd.f32 %v4682_v8, %v2181_v17 }
 0x2eb   : > { %v4853_v43 = vadd.f32 %v4760_v9, %v2220_v56 }
 0x2ec   : > { %v4856_v16 = vadd.f32 %v4764_v33, %v2219_v52 }
 0x2ed   : > { %2323 = vmax.xlane.f32.xlu1 %v4853_v43 }
 0x2ee   : > { %2321 = vmax.xlane.f32.xlu0 %v4856_v16 }
 0x35e   : > { %v4860_v57 = vpop.xlane.xlu1 %2295 }
 0x35f   : > { %v2326_v51 = vsub.f32 %v4770_v4, %v4860_v57  ;;  %v4864_v18 = vpop.xlane.xlu0 %2293 }
 0x360   : > { %v2325_v3 = vsub.f32 %v4774_v44, %v4864_v18 }
 0x361   : > { %v2343_v32 = vmul.f32 1.442695, %v2326_v51  ;;  %v5116_v51 = vld [vmem:[#allocation23_spill] sm:$0xff] }
 0x362   : > { %v2341_v9 = vmul.f32 1.442695, %v2325_v3  ;;  %v4868_v22 = vpop.xlane.xlu1 %2299 }
 0x363   : > { %v2328_v33 = vsub.f32 %v4782_v26, %v4868_v22  ;;  %v4872_v39 = vpop.xlane.xlu0 %2297 }
 0x364   : > { %3786 = vpow2.f32 %v2341_v9  ;;  %v2327_v60 = vsub.f32 %v4786_v36, %v4872_v39 }
 0x365   : > { %3788 = vpow2.f32 %v2343_v32  ;;  %v2347_v4 = vmul.f32 1.442695, %v2328_v33  ;;  %v5117_v32 = vld [vmem:[#allocation24_spill] sm:$0xff]  ;;  %v5118_v33 = vld [vmem:[#allocation25_spill] sm:$0xff] }
 0x366   : > { %v2345_v0 = vmul.f32 1.442695, %v2327_v60  ;;  %v4876_v59 = vpop.xlane.xlu1 %2303 }
 0x367   : > { %v2330_v44 = vsub.f32 %v4794_v29, %v4876_v59  ;;  %v4880_v21 = vpop.xlane.xlu0 %2301 }
 0x368   : > { %3790 = vpow2.f32 %v2345_v0  ;;  %v2329_v26 = vsub.f32 %v4798_v49, %v4880_v21  ;;  %v5119_v0 = vld [vmem:[#allocation26_spill] sm:$0xff] }
 0x369   : > { %3792 = vpow2.f32 %v2347_v4  ;;  %v2351_v7 = vmul.f32 1.442695, %v2330_v44 }
 0x36a   : > { %v2349_v42 = vmul.f32 1.442695, %v2329_v26  ;;  %v4884_v28 = vpop.xlane.xlu1 %2307 }
 0x36b   : > { %v2332_v36 = vsub.f32 %v4806_v38, %v4884_v28  ;;  %v4888_v62 = vpop.xlane.xlu0 %2305 }
 0x36c   : > { %3794 = vpow2.f32 %v2349_v42  ;;  %v2331_v29 = vsub.f32 %v4810_v48, %v4888_v62 }
 0x36d   : > { %3796 = vpow2.f32 %v2351_v7  ;;  %v2355_v2 = vmul.f32 1.442695, %v2332_v36 }
 0x36e   : > { %v3787_v35 = vpop.eup %3786  ;;  %v2353_v41 = vmul.f32 1.442695, %v2331_v29  ;;  %v4892_v20 = vpop.xlane.xlu1 %2311 }
 0x36f   : > { %v3789_v49 = vpop.eup %3788  ;;  %v2334_v27 = vsub.f32 %v4818_v24, %v4892_v20  ;;  %3419 = vmatprep.mubr.f32.mxu0 %v3787_v35  ;;  %v4896_v37 = vpop.xlane.xlu0 %2309 }
 0x370   : > { %3798 = vpow2.f32 %v2353_v41  ;;  %v2333_v38 = vsub.f32 %v4822_v40, %v4896_v37  ;;  %3420 = vmatmul.mubr.f32.vlgmr.msra.gmra.mrb[32].mxu0 %v3789_v49 }
 0x371   : > { %3800 = vpow2.f32 %v2355_v2  ;;  %v2359_v48 = vmul.f32 1.442695, %v2334_v27  ;;  %3554 = vmatpush3.bf16.msra.mxu0 %v5112_v61 }
 0x372   : > { %v3791_v45 = vpop.eup %3790  ;;  %v2357_v12 = vmul.f32 1.442695, %v2333_v38  ;;  %v4901_v25 = vpop.xlane.xlu1 %2315  ;;  %3556 = vmatprep.subr.bf16.mxu0 %v5113_v54 }
 0x373   : > { %v3793_v11 = vpop.eup %3792  ;;  %v2336_v24 = vsub.f32 %v4830_v14, %v4901_v25  ;;  %3422 = vmatprep.mubr.f32.mxu0 %v3791_v45  ;;  %v4906_v30 = vpop.xlane.xlu0 %2313 }
 0x374   : > { %3802 = vpow2.f32 %v2357_v12  ;;  %v2335_v40 = vsub.f32 %v4834_v15, %v4906_v30  ;;  %3423 = vmatmul.mubr.f32.gmra.mrb[34].mxu0 %v3793_v11 }
 0x375   : > { %3804 = vpow2.f32 %v2359_v48  ;;  %v2363_v58 = vmul.f32 1.442695, %v2336_v24  ;;  %3558 = vmatpush3.bf16.msra.mxu0 %v5113_v54 }
 0x376   : > { %v3795_v47 = vpop.eup %3794  ;;  %v2361_v23 = vmul.f32 1.442695, %v2335_v40  ;;  %v4911_v34 = vpop.xlane.xlu1 %2319  ;;  %3560 = vmatprep.subr.bf16.mxu0 %v5114_v53 }
 0x377   : > { %v3797_v50 = vpop.eup %3796  ;;  %v2338_v14 = vsub.f32 %v4842_v31, %v4911_v34  ;;  %3425 = vmatprep.mubr.f32.mxu0 %v3795_v47  ;;  %v4916_v5 = vpop.xlane.xlu0 %2317 }
 0x378   : > { %3806 = vpow2.f32 %v2361_v23  ;;  %v2337_v63 = vsub.f32 %v4846_v13, %v4916_v5  ;;  %3426 = vmatmul.mubr.f32.gmra.mrb[36].mxu0 %v3797_v50  ;;  %v5120_v50 = vld [vmem:[#allocation17_spill] sm:$0xff] }
 0x379   : > { %3808 = vpow2.f32 %v2363_v58  ;;  %v2367_v15 = vmul.f32 1.442695, %v2338_v14  ;;  %3562 = vmatpush3.bf16.msra.mxu0 %v5114_v53 }
 0x37a   : > { %v3799_v10 = vpop.eup %3798  ;;  %v2365_v1 = vmul.f32 1.442695, %v2337_v63  ;;  %v4921_v46 = vpop.xlane.xlu1 %2323  ;;  %3564 = vmatprep.subr.bf16.mxu0 %v5115_v19 }
 0x37b   : > { %v3801_v6 = vpop.eup %3800  ;;  %v2340_v55 = vsub.f32 %v4853_v43, %v4921_v46  ;;  %3428 = vmatprep.mubr.f32.mxu0 %v3799_v10  ;;  %v4926_v31 = vpop.xlane.xlu0 %2321 }
 0x37c   : > { %3810 = vpow2.f32 %v2365_v1  ;;  %v2339_v17 = vsub.f32 %v4856_v16, %v4926_v31  ;;  %3429 = vmatmul.mubr.f32.gmra.mrb[38].mxu0 %v3801_v6 }
 0x37d   : > { %3812 = vpow2.f32 %v2367_v15  ;;  %v2371_v13 = vmul.f32 1.442695, %v2340_v55  ;;  %3566 = vmatpush3.bf16.msra.mxu0 %v5115_v19  ;;  %v5121_v15 = vld [vmem:[#allocation13_spill] sm:$0xff] }
 0x37e   : > { %v3803_v56 = vpop.eup %3802  ;;  %v2369_v52 = vmul.f32 1.442695, %v2339_v17  ;;  %3568 = vmatprep.subr.bf16.mxu0 %v5116_v51 }
 0x37f   : > { %v3805_v3 = vpop.eup %3804  ;;  %3431 = vmatprep.mubr.f32.mxu0 %v3803_v56  ;;  %v5122_v56 = vld [vmem:[#allocation15_spill] sm:$0xff] }
 0x380   : > { %3814 = vpow2.f32 %v2369_v52  ;;  %3432 = vmatmul.mubr.f32.gmra.mrb[40].mxu0 %v3805_v3  ;;  %v5123_v3 = vld [vmem:[#allocation11_spill] sm:$0xff] }
 0x381   : > { %3816 = vpow2.f32 %v2371_v13  ;;  %3570 = vmatpush3.bf16.msra.mxu0 %v5116_v51 }
 0x382   : > { %v3807_v43 = vpop.eup %3806  ;;  %3572 = vmatprep.subr.bf16.mxu0 %v5117_v32 }
 0x383   : > { %v3809_v16 = vpop.eup %3808  ;;  %3434 = vmatprep.mubr.f32.mxu0 %v3807_v43 }
 0x384   : > { %3435 = vmatmul.mubr.f32.gmra.mrb[42].mxu0 %v3809_v16 }
 0x385   : > { %3574 = vmatpush3.bf16.msra.mxu0 %v5117_v32 }
 0x386   : > { %v3811_v9 = vpop.eup %3810  ;;  %3576 = vmatprep.subr.bf16.mxu0 %v5118_v33 }
 0x387   : > { %v3813_v60 = vpop.eup %3812  ;;  %3437 = vmatprep.mubr.f32.mxu0 %v3811_v9 }
 0x388   : > { %3438 = vmatmul.mubr.f32.gmra.mrb[44].mxu0 %v3813_v60 }
 0x389   : > { %3578 = vmatpush3.bf16.msra.mxu0 %v5118_v33 }
 0x38a   : > { %v3815_v4 = vpop.eup %3814  ;;  %3580 = vmatprep.subr.bf16.mxu0 %v5119_v0 }
 0x38b   : > { %v3817_v44 = vpop.eup %3816  ;;  %3440 = vmatprep.mubr.f32.mxu0 %v3815_v4 }
 0x38c   : > { %3441 = vmatmul.mubr.f32.gmra.mrb[46].mxu0 %v3817_v44  ;;  %v5124_v44 = vld [vmem:[#allocation21_spill] sm:$0xff] }
 0x38d   : > { %3582 = vmatpush3.bf16.msra.mxu0 %v5119_v0 }
 0x443   : > { %v3421_v26 = vpop.f32.mrb[32].mxu0 }
 0x444   : > { %3818 = vlog2.f32 %v3421_v26  ;;  %v2439_v7 = vpop.f32.mrb[33].mxu0 }
 0x445   : > { %3820 = vlog2.f32 %v2439_v7 }
 0x447   : > { %v3424_v42 = vpop.f32.mrb[34].mxu0 }
 0x448   : > { %3822 = vlog2.f32 %v3424_v42  ;;  %v2449_v36 = vpop.f32.mrb[35].mxu0  ;;  %v5125_v42 = vld [vmem:[#allocation19_spill] sm:$0xff] }
 0x449   : > { %3824 = vlog2.f32 %v2449_v36 }
 0x44b   : > { %v3427_v29 = vpop.f32.mrb[36].mxu0 }
 0x44c   : > { %3826 = vlog2.f32 %v3427_v29  ;;  %v2459_v2 = vpop.f32.mrb[37].mxu0 }
 0x44d   : > { %3828 = vlog2.f32 %v2459_v2 }
 0x44e   : > { %v3819_v35 = vpop.eup %3818 }
 0x44f   : > { %v3821_v41 = vpop.eup %3820  ;;  %v2521_v49 = vmul.f32 0.6931472, %v3819_v35  ;;  %v3430_v27 = vpop.f32.mrb[38].mxu0 }
 0x450   : > { %v2519_v38 = vmul.f32 0.6931472, %v3821_v41  ;;  %3830 = vlog2.f32 %v3430_v27  ;;  %v2469_v48 = vpop.f32.mrb[39].mxu0 }
 0x451   : > { %v2551_v61 = vadd.f32 %v2521_v49, %v4860_v57  ;;  %3832 = vlog2.f32 %v2469_v48  ;;  %v5126_v48 = vld [vmem:[#allocation20_spill] sm:$0xff] }
 0x452   : > { %v3823_v45 = vpop.eup %3822  ;;  %v2550_v12 = vadd.f32 %v2519_v38, %v4864_v18 }
 0x453   : > { %v3825_v54 = vpop.eup %3824  ;;  %v2525_v11 = vmul.f32 0.6931472, %v3823_v45  ;;  %v3433_v24 = vpop.f32.mrb[40].mxu0  ;;  %v2567_v40 = vadd.f32 %v4682_v8, %v2551_v61 }
 0x454   : > { %v2523_v58 = vmul.f32 0.6931472, %v3825_v54  ;;  %3834 = vlog2.f32 %v3433_v24  ;;  %v2479_v47 = vpop.f32.mrb[41].mxu0  ;;  %v2566_v23 = vadd.f32 %v4682_v8, %v2550_v12  ;;  %v5127_v12 = vld [vmem:[#allocation18_spill] sm:$0xff] }
 0x455   : > { %v2553_v53 = vadd.f32 %v2525_v11, %v4868_v22  ;;  %3836 = vlog2.f32 %v2479_v47  ;;  %v2583_v14 = vadd.f32 %v2567_v40, %v5120_v50 }
 0x456   : > { %v3827_v57 = vpop.eup %3826  ;;  %v2552_v63 = vadd.f32 %v2523_v58, %v4872_v39  ;;  %v2582_v18 = vadd.f32 %v2566_v23, %v5121_v15 }
 0x457   : > { %v3829_v10 = vpop.eup %3828  ;;  %v2529_v1 = vmul.f32 0.6931472, %v3827_v57  ;;  %v3436_v19 = vpop.f32.mrb[42].mxu0  ;;  %v2569_v6 = vadd.f32 %v4682_v8, %v2553_v53 }
 0x458   : > { %v2527_v55 = vmul.f32 0.6931472, %v3829_v10  ;;  %3838 = vlog2.f32 %v3436_v19  ;;  %v2489_v17 = vpop.f32.mrb[43].mxu0  ;;  %v2568_v13 = vadd.f32 %v4682_v8, %v2552_v63 }
 0x459   : > { %v2555_v22 = vadd.f32 %v2529_v1, %v4876_v59  ;;  %3840 = vlog2.f32 %v2489_v17  ;;  %v2585_v52 = vadd.f32 %v2569_v6, %v5122_v56 }
 0x45a   : > { %v3831_v51 = vpop.eup %3830  ;;  %v2554_v39 = vadd.f32 %v2527_v55, %v4880_v21  ;;  %v2584_v43 = vadd.f32 %v2568_v13, %v5123_v3 }
 0x45b   : > { %v3833_v32 = vpop.eup %3832  ;;  %v2533_v16 = vmul.f32 0.6931472, %v3831_v51  ;;  %v3439_v9 = vpop.f32.mrb[44].mxu0  ;;  %v2571_v33 = vadd.f32 %v4682_v8, %v2555_v22 }
 0x45c   : > { %v2531_v60 = vmul.f32 0.6931472, %v3833_v32  ;;  %3842 = vlog2.f32 %v3439_v9  ;;  %v2499_v4 = vpop.f32.mrb[45].mxu0  ;;  %v2570_v0 = vadd.f32 %v4682_v8, %v2554_v39 }
 0x45d   : > { %v2557_v59 = vadd.f32 %v2533_v16, %v4884_v28  ;;  %3844 = vlog2.f32 %v2499_v4  ;;  %v2587_v26 = vadd.f32 %v2571_v33, %v5124_v44 }
 0x45e   : > { %v3835_v7 = vpop.eup %3834  ;;  %v2556_v21 = vadd.f32 %v2531_v60, %v4888_v62  ;;  %v2586_v36 = vadd.f32 %v2570_v0, %v5125_v42 }
 0x45f   : > { %v3837_v29 = vpop.eup %3836  ;;  %v2537_v2 = vmul.f32 0.6931472, %v3835_v7  ;;  %v3442_v35 = vpop.f32.mrb[46].mxu0  ;;  %v2573_v41 = vadd.f32 %v4682_v8, %v2557_v59 }
 0x460   : > { %v2535_v49 = vmul.f32 0.6931472, %v3837_v29  ;;  %3846 = vlog2.f32 %v3442_v35  ;;  %v2509_v27 = vpop.f32.mrb[47].mxu0  ;;  %v2572_v38 = vadd.f32 %v4682_v8, %v2556_v21 }
 0x461   : > { %v2559_v28 = vadd.f32 %v2537_v2, %v4892_v20  ;;  %3848 = vlog2.f32 %v2509_v27  ;;  %v2589_v61 = vadd.f32 %v2573_v41, %v5126_v48 }
 0x462   : > { %v3839_v45 = vpop.eup %3838  ;;  %v2558_v62 = vadd.f32 %v2535_v49, %v4896_v37  ;;  %v2588_v54 = vadd.f32 %v2572_v38, %v5127_v12 }
 0x463   : > { %v3841_v11 = vpop.eup %3840  ;;  %v2541_v24 = vmul.f32 0.6931472, %v3839_v45  ;;  %v2575_v40 = vadd.f32 %v4682_v8, %v2559_v28 }
 0x464   : > { %v2539_v58 = vmul.f32 0.6931472, %v3841_v11  ;;  %v2574_v47 = vadd.f32 %v4682_v8, %v2558_v62 }
 0x465   : > { %v2561_v23 = vadd.f32 %v2541_v24, %v4901_v25  ;;  %v2591_v53 = vadd.f32 %v2583_v14, %v2575_v40 }
 0x466   : > { %v3843_v50 = vpop.eup %3842  ;;  %v2560_v20 = vadd.f32 %v2539_v58, %v4906_v30  ;;  %v2590_v57 = vadd.f32 %v2582_v18, %v2574_v47 }
 0x467   : > { %v3845_v63 = vpop.eup %3844  ;;  %v2545_v15 = vmul.f32 0.6931472, %v3843_v50  ;;  %2620 = vmax.xlane.f32.xlu1 %v2591_v53  ;;  %v2577_v37 = vadd.f32 %v4682_v8, %v2561_v23 }
 0x468   : > { %v2543_v10 = vmul.f32 0.6931472, %v3845_v63  ;;  %2618 = vmax.xlane.f32.xlu0 %v2590_v57  ;;  %v2576_v1 = vadd.f32 %v4682_v8, %v2560_v20 }
 0x469   : > { %v2563_v19 = vadd.f32 %v2545_v15, %v4911_v34  ;;  %v2593_v6 = vadd.f32 %v2585_v52, %v2577_v37 }
 0x46a   : > { %v3847_v55 = vpop.eup %3846  ;;  %v2562_v25 = vadd.f32 %v2543_v10, %v4916_v5  ;;  %v2592_v14 = vadd.f32 %v2584_v43, %v2576_v1 }
 0x46b   : > { %v3849_v17 = vpop.eup %3848  ;;  %v2549_v13 = vmul.f32 0.6931472, %v3847_v55  ;;  %2624 = vmax.xlane.f32.xlu1 %v2593_v6  ;;  %v2579_v30 = vadd.f32 %v4682_v8, %v2563_v19  ;;  %v3882_v55 = vld [vmem:[%s5072_s3] ss:$0 sm:$0xff] }
 0x46c   : > { %v2547_v18 = vmul.f32 0.6931472, %v3849_v17  ;;  %2622 = vmax.xlane.f32.xlu0 %v2592_v14  ;;  %v2578_v22 = vadd.f32 %v4682_v8, %v2562_v25 }
 0x46d   : > { %v2565_v56 = vadd.f32 %v2549_v13, %v4921_v46  ;;  %v2595_v51 = vadd.f32 %v2587_v26, %v2579_v30  ;;  %v5128_v30 = vld [vmem:[#allocation16_spill] sm:$0xff] }
 0x46e   : > { %v2564_v39 = vadd.f32 %v2547_v18, %v4926_v31  ;;  %v2594_v34 = vadd.f32 %v2586_v36, %v2578_v22 }
 0x46f   : > { %2628 = vmax.xlane.f32.xlu1 %v2595_v51  ;;  %v2581_v52 = vadd.f32 %v4682_v8, %v2565_v56 }
 0x470   : > { %2626 = vmax.xlane.f32.xlu0 %v2594_v34  ;;  %v2580_v5 = vadd.f32 %v4682_v8, %v2564_v39 }
 0x471   : > { %v2597_v3 = vadd.f32 %v2589_v61, %v2581_v52 }
 0x472   : > { %v2596_v43 = vadd.f32 %v2588_v54, %v2580_v5 }
 0x473   : > { %2632 = vmax.xlane.f32.xlu1 %v2597_v3 }
 0x474   : > { %2630 = vmax.xlane.f32.xlu0 %v2596_v43 }
 0x4f4   : > { %v4979_v32 = vpop.xlane.xlu1 %2620 }
 0x4f5   : > { %v2635_v16 = vsub.f32 %v2591_v53, %v4979_v32  ;;  %v4982_v9 = vpop.xlane.xlu0 %2618 }
 0x4f6   : > { %v2634_v46 = vsub.f32 %v2590_v57, %v4982_v9 }
 0x4f7   : > { %v2644_v31 = vmul.f32 1.442695, %v2635_v16  ;;  %v5130_v16 = vld [vmem:[#allocation14_spill] sm:$0xff] }
 0x4f8   : > { %v2642_v33 = vmul.f32 1.442695, %v2634_v46  ;;  %v4985_v60 = vpop.xlane.xlu1 %2624 }
 0x4f9   : > { %v2637_v4 = vsub.f32 %v2593_v6, %v4985_v60  ;;  %v4988_v0 = vpop.xlane.xlu0 %2622 }
 0x4fa   : > { %3850 = vpow2.f32 %v2642_v33  ;;  %v2636_v8 = vsub.f32 %v2592_v14, %v4988_v0  ;;  %v5131_v33 = vld [vmem:[#allocation10_spill] sm:$0xff] }
 0x4fb   : > { %3852 = vpow2.f32 %v2644_v31  ;;  %v2648_v59 = vmul.f32 1.442695, %v2637_v4 }
 0x4fc   : > { %v2646_v44 = vmul.f32 1.442695, %v2636_v8  ;;  %v4991_v26 = vpop.xlane.xlu1 %2628 }
 0x4fd   : > { %v2639_v7 = vsub.f32 %v2595_v51, %v4991_v26  ;;  %v4994_v21 = vpop.xlane.xlu0 %2626  ;;  %v5129_v51 = vld [vmem:[#allocation12_spill] sm:$0xff] }
 0x4fe   : > { %3854 = vpow2.f32 %v2646_v44  ;;  %v2638_v42 = vsub.f32 %v2594_v34, %v4994_v21 }
 0x4ff   : > { %3856 = vpow2.f32 %v2648_v59  ;;  %v2652_v36 = vmul.f32 1.442695, %v2639_v7 }
 0x500   : > { %v2650_v29 = vmul.f32 1.442695, %v2638_v42  ;;  %v4997_v2 = vpop.xlane.xlu1 %2632 }
 0x501   : > { %v2641_v35 = vsub.f32 %v2597_v3, %v4997_v2  ;;  %v5000_v41 = vpop.xlane.xlu0 %2630 }
 0x502   : > { %3858 = vpow2.f32 %v2650_v29  ;;  %v2640_v49 = vsub.f32 %v2596_v43, %v5000_v41 }
 0x503   : > { %3860 = vpow2.f32 %v2652_v36  ;;  %v2656_v27 = vmul.f32 1.442695, %v2641_v35 }
 0x504   : > { %v3851_v38 = vpop.eup %3850  ;;  %v2654_v28 = vmul.f32 1.442695, %v2640_v49 }
 0x505   : > { %v3853_v48 = vpop.eup %3852  ;;  %3475 = vmatprep.mubr.f32.mxu0 %v3851_v38 }
 0x506   : > { %3862 = vpow2.f32 %v2654_v28  ;;  %3476 = vmatmul.mubr.f32.vlgmr.msra.gmra.mrb[48].mxu0 %v3853_v48 }
 0x507   : > { %3864 = vpow2.f32 %v2656_v27 }
 0x508   : > { %v3855_v61 = vpop.eup %3854 }
 0x509   : > { %v3857_v45 = vpop.eup %3856  ;;  %3478 = vmatprep.mubr.f32.mxu0 %v3855_v61 }
 0x50a   : > { %3479 = vmatmul.mubr.f32.gmra.mrb[50].mxu0 %v3857_v45 }
 0x50c   : > { %v3859_v62 = vpop.eup %3858 }
 0x50d   : > { %v3861_v12 = vpop.eup %3860  ;;  %3481 = vmatprep.mubr.f32.mxu0 %v3859_v62 }
 0x50e   : > { %3482 = vmatmul.mubr.f32.gmra.mrb[52].mxu0 %v3861_v12 }
 0x510   : > { %v3863_v54 = vpop.eup %3862 }
 0x511   : > { %v3865_v11 = vpop.eup %3864  ;;  %3484 = vmatprep.mubr.f32.mxu0 %v3863_v54 }
 0x512   : > { %3485 = vmatmul.mubr.f32.gmra.mrb[54].mxu0 %v3865_v11 }
 0x5d9   : > { %v3477_v24 = vpop.f32.mrb[48].mxu0 }
 0x5da   : > { %3866 = vlog2.f32 %v3477_v24  ;;  %v2724_v40 = vpop.f32.mrb[49].mxu0 }
 0x5db   : > { %3868 = vlog2.f32 %v2724_v40 }
 0x5dd   : > { %v3480_v58 = vpop.f32.mrb[50].mxu0 }
 0x5de   : > { %3870 = vlog2.f32 %v3480_v58  ;;  %v2734_v47 = vpop.f32.mrb[51].mxu0 }
 0x5df   : > { %3872 = vlog2.f32 %v2734_v47 }
 0x5e1   : > { %v3483_v23 = vpop.f32.mrb[52].mxu0 }
 0x5e2   : > { %3874 = vlog2.f32 %v3483_v23  ;;  %v2744_v53 = vpop.f32.mrb[53].mxu0 }
 0x5e3   : > { %3876 = vlog2.f32 %v2744_v53 }
 0x5e4   : > { %v3867_v50 = vpop.eup %3866 }
 0x5e5   : > { %v3869_v20 = vpop.eup %3868  ;;  %v2766_v57 = vmul.f32 0.6931472, %v3867_v50  ;;  %v3486_v63 = vpop.f32.mrb[54].mxu0 }
 0x5e6   : > { %v2764_v15 = vmul.f32 0.6931472, %v3869_v20  ;;  %3878 = vlog2.f32 %v3486_v63  ;;  %v2754_v37 = vpop.f32.mrb[55].mxu0 }
 0x5e7   : > { %v2780_v10 = vadd.f32 %v2766_v57, %v4979_v32  ;;  %3880 = vlog2.f32 %v2754_v37 }
 0x5e8   : > { %v3871_v1 = vpop.eup %3870  ;;  %v2779_v19 = vadd.f32 %v2764_v15, %v4982_v9 }
 0x5e9   : > { %v3873_v6 = vpop.eup %3872  ;;  %v2788_v25 = vadd.f32 %v3882_v55, %v2780_v10  ;;  %v2770_v14 = vmul.f32 0.6931472, %v3871_v1 }
 0x5ea   : > { %v2787_v17 = vadd.f32 %v3882_v55, %v2779_v19  ;;  %v2768_v13 = vmul.f32 0.6931472, %v3873_v6 }
 0x5eb   : > { %v2796_v18 = vadd.f32 %v2788_v25, %v5128_v30  ;;  %v2782_v22 = vadd.f32 %v2770_v14, %v4985_v60 }
 0x5ec   : > { %v3875_v56 = vpop.eup %3874  ;;  %v2795_v39 = vadd.f32 %v2787_v17, %v5129_v51  ;;  %v2781_v34 = vadd.f32 %v2768_v13, %v4988_v0 }
 0x5ed   : > { %v3877_v52 = vpop.eup %3876  ;;  %v2790_v5 = vadd.f32 %v3882_v55, %v2782_v22  ;;  %v2774_v3 = vmul.f32 0.6931472, %v3875_v56 }
 0x5ee   : > { %v2789_v43 = vadd.f32 %v3882_v55, %v2781_v34  ;;  %v2772_v32 = vmul.f32 0.6931472, %v3877_v52 }
 0x5ef   : > { %v2798_v9 = vadd.f32 %v2790_v5, %v5130_v16  ;;  %v2784_v46 = vadd.f32 %v2774_v3, %v4991_v26 }
 0x5f0   : > { %v3879_v31 = vpop.eup %3878  ;;  %v2797_v4 = vadd.f32 %v2789_v43, %v5131_v33  ;;  %v2783_v60 = vadd.f32 %v2772_v32, %v4994_v21 }
 0x5f1   : > { %v3881_v8 = vpop.eup %3880  ;;  %v2792_v59 = vadd.f32 %v3882_v55, %v2784_v46  ;;  %v2778_v44 = vmul.f32 0.6931472, %v3879_v31 }
 0x5f2   : > { %v2791_v0 = vadd.f32 %v3882_v55, %v2783_v60  ;;  %v2776_v7 = vmul.f32 0.6931472, %v3881_v8 }
 0x5f3   : > { %v2800_v42 = vadd.f32 %v2796_v18, %v2792_v59  ;;  %v2786_v36 = vadd.f32 %v2778_v44, %v4997_v2 }
 0x5f4   : > { %v2799_v29 = vadd.f32 %v2795_v39, %v2791_v0  ;;  %v2785_v35 = vadd.f32 %v2776_v7, %v5000_v41 }
 0x5f5   : > { %2804 = vst [vmem:[%s500_s13 + $0x8] sm:$0xff] %v2800_v42  ;;  %v2794_v26 = vadd.f32 %v3882_v55, %v2786_v36 }
 0x5f6   : > { %2803 = vst [vmem:[%s500_s13] sm:$0xff] %v2799_v29  ;;  %v2793_v21 = vadd.f32 %v3882_v55, %v2785_v35 }
 0x5f7   : > { %v2802_v49 = vadd.f32 %v2798_v9, %v2794_v26 }
 0x5f8   : > { %v2801_v2 = vadd.f32 %v2797_v4, %v2793_v21 }
 0x5f9   : > { %2806 = vst [vmem:[%s500_s13 + $0x18] sm:$0xff] %v2802_v49 }
 0x5fa   : > { %2805 = vst [vmem:[%s500_s13 + $0x10] sm:$0xff] %v2801_v2 }
 0x5fb   : > { %3896 = shalt.err (!%p3893_p5)
}
 0x5fc   : > { %s3897_s7 = scalar_lea.hbm %s5024_s23, 512  ;;  %s3901_s10 = scalar_lea.hbm %s5074_s5, 4096 }
 0x5fd   : > { %p3898_p7 = scmp.ne.s32.totalorder %s5024_s23, %s3897_s7  ;;  %p3902_p11 = scmp.lt.u32.totalorder %s5024_s23, %s5074_s5 }
 0x5fe   : > { %p3903_p12 = scmp.lt.u32.totalorder %s3901_s10, %s3897_s7  ;;  %p3905_p0 = scmp.lt.u32.totalorder %s3897_s7, %s5024_s23 }
 0x5ff   : > { %p3899_p9 = pnand %p3898_p7, %p4018_p6 }
 0x600   : > { %p3904_p13 = por %p3903_p12, %p3902_p11 }
 0x601   : > { %p3900_p10 = pneg %p3899_p9 }
 0x602   : > { %p3906_p1 = por %p3905_p0, %p3904_p13 }
 0x604   : > { %p3907_p2 = pnand %p3906_p1, %p3900_p10 }
 0x606   : > { %3910 = shalt.err (!%p3907_p2)
}
 0x607   : > { %s3948_s13 = smov 128   ;;  %s3949_s16 = smov 8  }
 0x608   : > { %3585 = dma.vmem_to_hbm [thread:$0]  (%p4018_p6), %s5026_s15, 512, %s5024_s23, %s2808_s22, %s3948_s13, %s3948_s13, %s3949_s16  }
 0x609 PF: > { %p3591_p3 = scmp.ge.s32.totalorder %s3945_s21, 2  ;;  %s2836_s17 = sand.u32 1, %s3933_s18  }
 0x60a   : > { %s2837_s25 = scalar_lea.sflag [#allocation5], %s2836_s17 }
 0x60b   : > { %p3588_p4 = pnand %p3591_p3, %p4022_p8 }
 0x60d   : > { %3928 = dma.done.wait (!%p3588_p4), %s2837_s25, 512  }
 0x60e   : > { %3930 = vsyncadd (!%p3588_p4), %s2837_s25, 4294966784  ;;  %p15_p5 = scmp.ge.s32.totalorder %s4003_s24, 10   ;;  %s5132_s18 = smov %s3937_s19 }
 0x60f   : > { %s5133_s19 = smov %s3941_s20  ;;  %s5134_s20 = smov %s4016_s27 }
 0x610   : > { %s5135_s21 = smov %s4003_s24  ;;  %17 = sbr.rel (!%p15_p5) target bundleno = 3 (0x3), region = 135 }
 0x617   :  { %2842 = vsyncpa [#allocation5], 1 }
 0x618   :  { %2844 = vsyncpa [#allocation5 + $0x1], 1 }

</bundles_post_ra>
